<compile_context>
chip_gen: v7x
topology: tpu7x:2x2x1
jax: 0.10.0
libtpu: 0.0.40
codegen_flags: <defaults>
</compile_context>

<pallas_src>
import functools

import jax
import jax.numpy as jnp
from jax.experimental import pallas as pl
from jax.experimental.pallas import tpu as pltpu


def torus_ae_kernel(x_ref,
                    w1_ref, b1_ref, w2_ref, b2_ref, w3_ref, b3_ref,
                    w4_ref, b4_ref, w5_ref, b5_ref, w6_ref, b6_ref,
                    recon_ref, z_ref, *, z_dim):
    """TorusAE forward on one (tile_b, x_dim_padded) batch tile; weights resident in VMEM."""
    bf16 = jnp.bfloat16
    f32 = jnp.float32

    # x streams in f32 or bf16; the MXU feed is bf16 either way (no-op cast for bf16 input).
    x = x_ref[...].astype(bf16)

    # ---- encoder (MXU in bf16, f32 accumulate; elementwise math in f32) ----
    h = jnp.sin(jnp.dot(x, w1_ref[...],
                        preferred_element_type=f32) + b1_ref[...])
    h = jnp.sin(jnp.dot(h.astype(bf16), w2_ref[...],
                        preferred_element_type=f32) + b2_ref[...])
    h3 = jnp.dot(h.astype(bf16), w3_ref[...],
                 preferred_element_type=f32) + b3_ref[...]

    cos_h3 = jnp.cos(h3)                     # (tb, z_dim)
    sin_h3 = jnp.sin(h3)                     # (tb, z_dim)

    # z = cat(cos(h3), sin(h3)) along features: write the two halves directly
    # (no XLU lane-concat, no temporary); width 2*z_dim is tiny and off the
    # decoder compute path.
    z_ref[:, :z_dim] = cos_h3.astype(z_ref.dtype)
    z_ref[:, z_dim:] = sin_h3.astype(z_ref.dtype)

    # ---- decoder ----
    # fc4 has K = 2*z_dim (tiny): unrolled VPU broadcast multiply-adds fed straight from
    # cos/sin.  (MXU alternative deferred pending a bundle dump -- see header comment.)
    w4 = w4_ref[...]                         # (2*z_dim, h_dim2), float32
    acc = b4_ref[...]                        # (1, h_dim2) -> broadcasts to (tb, h_dim2)
    for k in range(z_dim):                   # static unroll (z_dim is tiny)
        acc = acc + cos_h3[:, k:k + 1] * w4[k:k + 1, :]
        acc = acc + sin_h3[:, k:k + 1] * w4[z_dim + k:z_dim + k + 1, :]
    d = jnp.sin(acc)

    d = jnp.sin(jnp.dot(d.astype(bf16), w5_ref[...],
                        preferred_element_type=f32) + b5_ref[...])
    recon = jnp.dot(d.astype(bf16), w6_ref[...],
                    preferred_element_type=f32) + b6_ref[...]
    recon_ref[...] = recon.astype(recon_ref.dtype)


def _cdiv(a, b):
    return -(-a // b)


def _round_up(n, m):
    return _cdiv(n, m) * m


@functools.partial(jax.jit, static_argnames=("x_dim", "tile_b"))
def torus_ae_forward(x_nchw, params, *, x_dim, tile_b=512):
    """Flatten NCHW input and run the tiled Pallas kernel.

    Returns (reconstruction (B, x_dim), z (B, 2*z_dim)) like TorusAE.forward.
    Outputs inherit x's dtype; pass bf16 x (from a fusing producer) to halve streamed bytes.
    """
    x2d = x_nchw.reshape(-1, x_dim)          # torch .view(-1, x_dim)
    batch = x2d.shape[0]
    dtype = x2d.dtype

    h1 = params["w1"].shape[1]
    h2 = params["w2"].shape[1]
    z_dim = params["w3"].shape[1]
    z2 = 2 * z_dim

    # ---- batch tile selection ----
    # Multiple of 8 sublanes; default 512 rows (review: 512-1024 reaches ~85% of HBM roofline
    # vs ~63% at 256); clamp so the grid keeps >=4 steps (>=2 per TC on v7x megacore) whenever
    # the batch allows it.
    tile_b = max(8, _round_up(tile_b, 8))
    tile_b = min(tile_b, max(8, _round_up(_cdiv(batch, 4), 8)))
    padded_batch = _round_up(batch, tile_b)
    grid = (padded_batch // tile_b,)

    # ---- x_dim lane padding (lane-dense loads/stores, 128-aligned MXU K/N for fc1/fc6) ----
    xp = _round_up(x_dim, 128)
    w1, w6, b6 = params["w1"], params["w6"], params["b6"]
    if xp != x_dim:
        w1 = jnp.pad(w1, ((0, xp - x_dim), (0, 0)))      # extra input features are zero
        w6 = jnp.pad(w6, ((0, 0), (0, xp - x_dim)))      # extra outputs are zero
        b6 = jnp.pad(b6, ((0, 0), (0, xp - x_dim)))
    if padded_batch != batch or xp != x_dim:
        x2d = jnp.pad(x2d, ((0, padded_batch - batch), (0, xp - x_dim)))

    # MXU-fed weights in bf16 (half the DMA bytes, 2x MXU rate on v6e/v7x);
    # fc4 (VPU path) and all biases stay f32.
    bf16 = jnp.bfloat16
    weights = (
        w1.astype(bf16), params["b1"],
        params["w2"].astype(bf16), params["b2"],
        params["w3"].astype(bf16), params["b3"],
        params["w4"].astype(jnp.float32), params["b4"],
        params["w5"].astype(bf16), params["b5"],
        w6.astype(bf16), b6,
    )

    # Weights/biases: same (0, 0) block every grid step => DMA'd once, VMEM-resident.
    def resident(p):
        return pl.BlockSpec(p.shape, lambda i: (0, 0))

    in_specs = ([pl.BlockSpec((tile_b, xp), lambda i: (i, 0))]
                + [resident(p) for p in weights])
    out_specs = (
        pl.BlockSpec((tile_b, xp), lambda i: (i, 0)),
        pl.BlockSpec((tile_b, z2), lambda i: (i, 0)),
    )

    flops = 2 * padded_batch * (xp * h1 + h1 * h2 + h2 * z_dim
                                + z2 * h2 + h2 * h1 + h1 * xp)
    transcendentals = padded_batch * (h1 + h2 + z2 + h2 + h1)
    bytes_accessed = (
        padded_batch * xp * dtype.itemsize          # x in
        + padded_batch * xp * dtype.itemsize        # recon out
        + padded_batch * z2 * dtype.itemsize        # z out
        + sum(int(p.size) * p.dtype.itemsize for p in weights)
    )

    recon, z = pl.pallas_call(
        functools.partial(torus_ae_kernel, z_dim=z_dim),
        grid=grid,
        in_specs=in_specs,
        out_specs=out_specs,
        out_shape=(
            jax.ShapeDtypeStruct((padded_batch, xp), dtype),
            jax.ShapeDtypeStruct((padded_batch, z2), dtype),
        ),
        compiler_params=pltpu.CompilerParams(
            dimension_semantics=("parallel",),      # 2 TCs on v7x; harmless on v5e/v6e
            vmem_limit_bytes=32 * 1024 * 1024),     # > v5e's 16 MiB default; far above footprint
        cost_estimate=pl.CostEstimate(flops=flops,
                                      transcendentals=transcendentals,
                                      bytes_accessed=bytes_accessed),
    )(x2d, *weights)

    if padded_batch != batch or xp != x_dim:
        recon = recon[:batch, :x_dim]
        z = z[:batch]
    return recon, z


def init_params(key, x_dim, h_dim1, h_dim2, z_dim, dtype=jnp.float32):
    """Init mimicking nn.Linear's U(-1/sqrt(fan_in), +1/sqrt(fan_in)).

    Weights stored transposed: (in_features, out_features); biases (1, out).
    """
    dims = [
        ("1", x_dim, h_dim1),
        ("2", h_dim1, h_dim2),
        ("3", h_dim2, z_dim),
        ("4", 2 * z_dim, h_dim2),
        ("5", h_dim2, h_dim1),
        ("6", h_dim1, x_dim),
    ]
    params = {}
    for name, fan_in, fan_out in dims:
        key, kw, kb = jax.random.split(key, 3)
        bound = 1.0 / (fan_in ** 0.5)
        params[f"w{name}"] = jax.random.uniform(
            kw, (fan_in, fan_out), dtype=dtype, minval=-bound, maxval=bound)
        params[f"b{name}"] = jax.random.uniform(
            kb, (1, fan_out), dtype=dtype, minval=-bound, maxval=bound)
    return params


def torus_ae_reference_f32(x_nchw, params, x_dim):
    """Pure-JAX f32 reference with PyTorch TorusAE forward semantics."""
    x = x_nchw.reshape(-1, x_dim)
    h = jnp.sin(x @ params["w1"] + params["b1"])
    h = jnp.sin(h @ params["w2"] + params["b2"])
    h3 = h @ params["w3"] + params["b3"]
    z = jnp.concatenate([jnp.cos(h3), jnp.sin(h3)], axis=1)
    d = jnp.sin(z @ params["w4"] + params["b4"])
    d = jnp.sin(d @ params["w5"] + params["b5"])
    recon = d @ params["w6"] + params["b6"]
    return recon, z


def torus_ae_reference_matched(x_nchw, params, x_dim):
    """Reference mirroring the kernel's bf16 MXU feeds (tight numerical check)."""
    bf16, f32 = jnp.bfloat16, jnp.float32
    x = x_nchw.reshape(-1, x_dim)
    h = jnp.sin(jnp.dot(x.astype(bf16), params["w1"].astype(bf16),
                        preferred_element_type=f32) + params["b1"])
    h = jnp.sin(jnp.dot(h.astype(bf16), params["w2"].astype(bf16),
                        preferred_element_type=f32) + params["b2"])
    h3 = jnp.dot(h.astype(bf16), params["w3"].astype(bf16),
                 preferred_element_type=f32) + params["b3"]
    z = jnp.concatenate([jnp.cos(h3), jnp.sin(h3)], axis=1)
    d = jnp.sin(jnp.dot(z, params["w4"], preferred_element_type=f32) + params["b4"])
    d = jnp.sin(jnp.dot(d.astype(bf16), params["w5"].astype(bf16),
                        preferred_element_type=f32) + params["b5"])
    recon = jnp.dot(d.astype(bf16), params["w6"].astype(bf16),
                    preferred_element_type=f32) + params["b6"]
    return recon, z


if __name__ == "__main__":
    # Small shapes consistent with the module: image input (B, C, H, W) that forward()
    # flattens to (B, x_dim).  x_dim = 144 is deliberately NOT a multiple of 128 to
    # exercise the new lane-padding path (pads to 256 inside the wrapper).
    B, C, H, W = 16, 1, 12, 12
    x_dim = C * H * W          # 144 -> padded to 256 lanes internally
    h_dim1, h_dim2, z_dim = 128, 64, 2

    key = jax.random.PRNGKey(0)
    key, kx = jax.random.split(key)
    x = jax.random.normal(kx, (B, C, H, W), dtype=jnp.float32)
    params = init_params(key, x_dim, h_dim1, h_dim2, z_dim)

    # Default tile_b=512 self-clamps to 8 rows here (keeps >=4-ish grid steps for this tiny
    # demo batch => grid=(2,), exercising the pipeline); production batches get 512-row tiles.
    recon, z = torus_ae_forward(x, params, x_dim=x_dim)
    recon = jax.block_until_ready(recon)
    z = jax.block_until_ready(z)

    assert recon.shape == (B, x_dim) and z.shape == (B, 2 * z_dim)

    # Tight check vs. a reference that uses the same bf16 MXU feeds.
    recon_m, z_m = torus_ae_reference_matched(x, params, x_dim)
    assert jnp.allclose(recon, recon_m, atol=1e-3, rtol=1e-3), \
        float(jnp.max(jnp.abs(recon - recon_m)))
    assert jnp.allclose(z, z_m, atol=1e-3, rtol=1e-3), \
        float(jnp.max(jnp.abs(z - z_m)))

    # Loose semantic check vs. the pure-f32 PyTorch-equivalent reference
    # (difference is only the intentional bf16 matmul-input rounding).
    recon_f, z_f = torus_ae_reference_f32(x, params, x_dim)
    assert jnp.allclose(recon, recon_f, atol=1e-1), \
        float(jnp.max(jnp.abs(recon - recon_f)))
    assert jnp.allclose(z, z_f, atol=5e-2), \
        float(jnp.max(jnp.abs(z - z_f)))

    print("KERNEL_OK")
</pallas_src>

<mosaic_0001>
module attributes {stable_mosaic.version = 11 : i64} {
  func.func @torus_ae_kernel(%arg0: i32, %arg1: memref<8x256xf32, #tpu.memory_space<vmem>>, %arg2: memref<256x128xbf16, #tpu.memory_space<vmem>>, %arg3: memref<1x128xf32, #tpu.memory_space<vmem>>, %arg4: memref<128x64xbf16, #tpu.memory_space<vmem>>, %arg5: memref<1x64xf32, #tpu.memory_space<vmem>>, %arg6: memref<64x2xbf16, #tpu.memory_space<vmem>>, %arg7: memref<1x2xf32, #tpu.memory_space<vmem>>, %arg8: memref<4x64xf32, #tpu.memory_space<vmem>>, %arg9: memref<1x64xf32, #tpu.memory_space<vmem>>, %arg10: memref<64x128xbf16, #tpu.memory_space<vmem>>, %arg11: memref<1x128xf32, #tpu.memory_space<vmem>>, %arg12: memref<128x256xbf16, #tpu.memory_space<vmem>>, %arg13: memref<1x256xf32, #tpu.memory_space<vmem>>, %arg14: memref<8x256xf32, #tpu.memory_space<vmem>>, %arg15: memref<8x4xf32, #tpu.memory_space<vmem>>) attributes {dimension_semantics = [#tpu.dimension_semantics<parallel>], iteration_bounds = array<i64: 2>, scalar_prefetch = 0 : i64, scratch_operands = 0 : i64, tpu.core_type = #tpu.core_type<tc>, window_params = [{transform_indices = @transform_0, window_bounds = array<i64: 8, 256>}, {pipeline_mode = #tpu.pipeline_mode<synchronous>, transform_indices = @transform_1, window_bounds = array<i64: 256, 128>}, {pipeline_mode = #tpu.pipeline_mode<synchronous>, transform_indices = @transform_2, window_bounds = array<i64: 1, 128>}, {pipeline_mode = #tpu.pipeline_mode<synchronous>, transform_indices = @transform_3, window_bounds = array<i64: 128, 64>}, {pipeline_mode = #tpu.pipeline_mode<synchronous>, transform_indices = @transform_4, window_bounds = array<i64: 1, 64>}, {pipeline_mode = #tpu.pipeline_mode<synchronous>, transform_indices = @transform_5, window_bounds = array<i64: 64, 2>}, {pipeline_mode = #tpu.pipeline_mode<synchronous>, transform_indices = @transform_6, window_bounds = array<i64: 1, 2>}, {pipeline_mode = #tpu.pipeline_mode<synchronous>, transform_indices = @transform_7, window_bounds = array<i64: 4, 64>}, {pipeline_mode = #tpu.pipeline_mode<synchronous>, transform_indices = @transform_8, window_bounds = array<i64: 1, 64>}, {pipeline_mode = #tpu.pipeline_mode<synchronous>, transform_indices = @transform_9, window_bounds = array<i64: 64, 128>}, {pipeline_mode = #tpu.pipeline_mode<synchronous>, transform_indices = @transform_10, window_bounds = array<i64: 1, 128>}, {pipeline_mode = #tpu.pipeline_mode<synchronous>, transform_indices = @transform_11, window_bounds = array<i64: 128, 256>}, {pipeline_mode = #tpu.pipeline_mode<synchronous>, transform_indices = @transform_12, window_bounds = array<i64: 1, 256>}, {transform_indices = @transform_13, window_bounds = array<i64: 8, 256>}, {transform_indices = @transform_14, window_bounds = array<i64: 8, 4>}]} {
    %c0 = arith.constant 0 : index
    %c0_0 = arith.constant 0 : index
    %0 = vector.load %arg1[%c0, %c0_0] : memref<8x256xf32, #tpu.memory_space<vmem>>, vector<8x256xf32>
    %1 = arith.truncf %0 : vector<8x256xf32> to vector<8x256xbf16>
    %c0_1 = arith.constant 0 : index
    %c0_2 = arith.constant 0 : index
    %2 = vector.load %arg2[%c0_1, %c0_2] : memref<256x128xbf16, #tpu.memory_space<vmem>>, vector<256x128xbf16>
    %cst = arith.constant dense<0.000000e+00> : vector<8x128xf32>
    %3 = tpu.matmul %1, %2, %cst {dimension_numbers = #tpu.dot_dimension_numbers<[1], [0], [0], [1], [0, 0, 1, 1], [], []>} : vector<8x256xbf16>, vector<256x128xbf16>, vector<8x128xf32> -> vector<8x128xf32>
    %c0_3 = arith.constant 0 : index
    %c0_4 = arith.constant 0 : index
    %4 = vector.load %arg3[%c0_3, %c0_4] : memref<1x128xf32, #tpu.memory_space<vmem>>, vector<1x128xf32>
    %5 = vector.broadcast %4 : vector<1x128xf32> to vector<8x128xf32>
    %6 = arith.addf %3, %5 : vector<8x128xf32>
    %7 = math.sin %6 : vector<8x128xf32>
    %8 = arith.truncf %7 : vector<8x128xf32> to vector<8x128xbf16>
    %c0_5 = arith.constant 0 : index
    %c0_6 = arith.constant 0 : index
    %9 = vector.load %arg4[%c0_5, %c0_6] : memref<128x64xbf16, #tpu.memory_space<vmem>>, vector<128x64xbf16>
    %cst_7 = arith.constant dense<0.000000e+00> : vector<8x64xf32>
    %10 = tpu.matmul %8, %9, %cst_7 {dimension_numbers = #tpu.dot_dimension_numbers<[1], [0], [0], [1], [0, 0, 1, 1], [], []>} : vector<8x128xbf16>, vector<128x64xbf16>, vector<8x64xf32> -> vector<8x64xf32>
    %c0_8 = arith.constant 0 : index
    %c0_9 = arith.constant 0 : index
    %11 = vector.load %arg5[%c0_8, %c0_9] : memref<1x64xf32, #tpu.memory_space<vmem>>, vector<1x64xf32>
    %12 = vector.broadcast %11 : vector<1x64xf32> to vector<8x64xf32>
    %13 = arith.addf %10, %12 : vector<8x64xf32>
    %14 = math.sin %13 : vector<8x64xf32>
    %15 = arith.truncf %14 : vector<8x64xf32> to vector<8x64xbf16>
    %c0_10 = arith.constant 0 : index
    %c0_11 = arith.constant 0 : index
    %16 = vector.load %arg6[%c0_10, %c0_11] : memref<64x2xbf16, #tpu.memory_space<vmem>>, vector<64x2xbf16>
    %cst_12 = arith.constant dense<0.000000e+00> : vector<8x2xf32>
    %17 = tpu.matmul %15, %16, %cst_12 {dimension_numbers = #tpu.dot_dimension_numbers<[1], [0], [0], [1], [0, 0, 1, 1], [], []>} : vector<8x64xbf16>, vector<64x2xbf16>, vector<8x2xf32> -> vector<8x2xf32>
    %c0_13 = arith.constant 0 : index
    %c0_14 = arith.constant 0 : index
    %18 = vector.load %arg7[%c0_13, %c0_14] : memref<1x2xf32, #tpu.memory_space<vmem>>, vector<1x2xf32>
    %19 = vector.broadcast %18 : vector<1x2xf32> to vector<8x2xf32>
    %20 = arith.addf %17, %19 : vector<8x2xf32>
    %21 = math.cos %20 : vector<8x2xf32>
    %22 = math.sin %20 : vector<8x2xf32>
    %c0_15 = arith.constant 0 : index
    %c0_16 = arith.constant 0 : index
    %23 = vector.load %arg15[%c0_15, %c0_16] : memref<8x4xf32, #tpu.memory_space<vmem>>, vector<8x2xf32>
    tpu.vector_store %arg15[%c0_15, %c0_16], %21 {strides = array<i32>} : memref<8x4xf32, #tpu.memory_space<vmem>>, vector<8x2xf32>,
    %c0_17 = arith.constant 0 : index
    %c2 = arith.constant 2 : index
    %24 = vector.load %arg15[%c0_17, %c2] : memref<8x4xf32, #tpu.memory_space<vmem>>, vector<8x2xf32>
    tpu.vector_store %arg15[%c0_17, %c2], %22 {strides = array<i32>} : memref<8x4xf32, #tpu.memory_space<vmem>>, vector<8x2xf32>,
    %c0_18 = arith.constant 0 : index
    %c0_19 = arith.constant 0 : index
    %25 = vector.load %arg8[%c0_18, %c0_19] : memref<4x64xf32, #tpu.memory_space<vmem>>, vector<4x64xf32>
    %c0_20 = arith.constant 0 : index
    %c0_21 = arith.constant 0 : index
    %26 = vector.load %arg9[%c0_20, %c0_21] : memref<1x64xf32, #tpu.memory_space<vmem>>, vector<1x64xf32>
    %27 = vector.extract_strided_slice %21 {offsets = [0, 0], sizes = [8, 1], strides = [1, 1]} : vector<8x2xf32> to vector<8x1xf32>
    %28 = vector.extract_strided_slice %25 {offsets = [0, 0], sizes = [1, 64], strides = [1, 1]} : vector<4x64xf32> to vector<1x64xf32>
    %29 = vector.broadcast %27 : vector<8x1xf32> to vector<8x64xf32>
    %30 = vector.broadcast %28 : vector<1x64xf32> to vector<8x64xf32>
    %31 = arith.mulf %29, %30 : vector<8x64xf32>
    %32 = vector.broadcast %26 : vector<1x64xf32> to vector<8x64xf32>
    %33 = arith.addf %32, %31 : vector<8x64xf32>
    %34 = vector.extract_strided_slice %22 {offsets = [0, 0], sizes = [8, 1], strides = [1, 1]} : vector<8x2xf32> to vector<8x1xf32>
    %35 = vector.extract_strided_slice %25 {offsets = [2, 0], sizes = [1, 64], strides = [1, 1]} : vector<4x64xf32> to vector<1x64xf32>
    %36 = vector.broadcast %34 : vector<8x1xf32> to vector<8x64xf32>
    %37 = vector.broadcast %35 : vector<1x64xf32> to vector<8x64xf32>
    %38 = arith.mulf %36, %37 : vector<8x64xf32>
    %39 = arith.addf %33, %38 : vector<8x64xf32>
    %40 = vector.extract_strided_slice %21 {offsets = [0, 1], sizes = [8, 1], strides = [1, 1]} : vector<8x2xf32> to vector<8x1xf32>
    %41 = vector.extract_strided_slice %25 {offsets = [1, 0], sizes = [1, 64], strides = [1, 1]} : vector<4x64xf32> to vector<1x64xf32>
    %42 = vector.broadcast %40 : vector<8x1xf32> to vector<8x64xf32>
    %43 = vector.broadcast %41 : vector<1x64xf32> to vector<8x64xf32>
    %44 = arith.mulf %42, %43 : vector<8x64xf32>
    %45 = arith.addf %39, %44 : vector<8x64xf32>
    %46 = vector.extract_strided_slice %22 {offsets = [0, 1], sizes = [8, 1], strides = [1, 1]} : vector<8x2xf32> to vector<8x1xf32>
    %47 = vector.extract_strided_slice %25 {offsets = [3, 0], sizes = [1, 64], strides = [1, 1]} : vector<4x64xf32> to vector<1x64xf32>
    %48 = vector.broadcast %46 : vector<8x1xf32> to vector<8x64xf32>
    %49 = vector.broadcast %47 : vector<1x64xf32> to vector<8x64xf32>
    %50 = arith.mulf %48, %49 : vector<8x64xf32>
    %51 = arith.addf %45, %50 : vector<8x64xf32>
    %52 = math.sin %51 : vector<8x64xf32>
    %53 = arith.truncf %52 : vector<8x64xf32> to vector<8x64xbf16>
    %c0_22 = arith.constant 0 : index
    %c0_23 = arith.constant 0 : index
    %54 = vector.load %arg10[%c0_22, %c0_23] : memref<64x128xbf16, #tpu.memory_space<vmem>>, vector<64x128xbf16>
    %cst_24 = arith.constant dense<0.000000e+00> : vector<8x128xf32>
    %55 = tpu.matmul %53, %54, %cst_24 {dimension_numbers = #tpu.dot_dimension_numbers<[1], [0], [0], [1], [0, 0, 1, 1], [], []>} : vector<8x64xbf16>, vector<64x128xbf16>, vector<8x128xf32> -> vector<8x128xf32>
    %c0_25 = arith.constant 0 : index
    %c0_26 = arith.constant 0 : index
    %56 = vector.load %arg11[%c0_25, %c0_26] : memref<1x128xf32, #tpu.memory_space<vmem>>, vector<1x128xf32>
    %57 = vector.broadcast %56 : vector<1x128xf32> to vector<8x128xf32>
    %58 = arith.addf %55, %57 : vector<8x128xf32>
    %59 = math.sin %58 : vector<8x128xf32>
    %60 = arith.truncf %59 : vector<8x128xf32> to vector<8x128xbf16>
    %c0_27 = arith.constant 0 : index
    %c0_28 = arith.constant 0 : index
    %61 = vector.load %arg12[%c0_27, %c0_28] : memref<128x256xbf16, #tpu.memory_space<vmem>>, vector<128x256xbf16>
    %cst_29 = arith.constant dense<0.000000e+00> : vector<8x256xf32>
    %62 = tpu.matmul %60, %61, %cst_29 {dimension_numbers = #tpu.dot_dimension_numbers<[1], [0], [0], [1], [0, 0, 1, 1], [], []>} : vector<8x128xbf16>, vector<128x256xbf16>, vector<8x256xf32> -> vector<8x256xf32>
    %c0_30 = arith.constant 0 : index
    %c0_31 = arith.constant 0 : index
    %63 = vector.load %arg13[%c0_30, %c0_31] : memref<1x256xf32, #tpu.memory_space<vmem>>, vector<1x256xf32>
    %64 = vector.broadcast %63 : vector<1x256xf32> to vector<8x256xf32>
    %65 = arith.addf %62, %64 : vector<8x256xf32>
    %c0_32 = arith.constant 0 : index
    %c0_33 = arith.constant 0 : index
    %66 = vector.load %arg14[%c0_32, %c0_33] : memref<8x256xf32, #tpu.memory_space<vmem>>, vector<8x256xf32>
    tpu.vector_store %arg14[%c0_32, %c0_33], %65 {strides = array<i32>} : memref<8x256xf32, #tpu.memory_space<vmem>>, vector<8x256xf32>,
    return
  }
  func.func @transform_0(%arg0: i32) -> (i32, i32) {
    %c0_i32 = arith.constant 0 : i32
    %c0_i32_0 = arith.constant 0 : i32
    return %arg0, %c0_i32 : i32, i32
  }
  func.func @transform_1(%arg0: i32) -> (i32, i32) {
    %c0_i32 = arith.constant 0 : i32
    %c0_i32_0 = arith.constant 0 : i32
    %c0_i32_1 = arith.constant 0 : i32
    return %c0_i32, %c0_i32_0 : i32, i32
  }
  func.func @transform_2(%arg0: i32) -> (i32, i32) {
    %c0_i32 = arith.constant 0 : i32
    %c0_i32_0 = arith.constant 0 : i32
    %c0_i32_1 = arith.constant 0 : i32
    return %c0_i32, %c0_i32_0 : i32, i32
  }
  func.func @transform_3(%arg0: i32) -> (i32, i32) {
    %c0_i32 = arith.constant 0 : i32
    %c0_i32_0 = arith.constant 0 : i32
    %c0_i32_1 = arith.constant 0 : i32
    return %c0_i32, %c0_i32_0 : i32, i32
  }
  func.func @transform_4(%arg0: i32) -> (i32, i32) {
    %c0_i32 = arith.constant 0 : i32
    %c0_i32_0 = arith.constant 0 : i32
    %c0_i32_1 = arith.constant 0 : i32
    return %c0_i32, %c0_i32_0 : i32, i32
  }
  func.func @transform_5(%arg0: i32) -> (i32, i32) {
    %c0_i32 = arith.constant 0 : i32
    %c0_i32_0 = arith.constant 0 : i32
    %c0_i32_1 = arith.constant 0 : i32
    return %c0_i32, %c0_i32_0 : i32, i32
  }
  func.func @transform_6(%arg0: i32) -> (i32, i32) {
    %c0_i32 = arith.constant 0 : i32
    %c0_i32_0 = arith.constant 0 : i32
    %c0_i32_1 = arith.constant 0 : i32
    return %c0_i32, %c0_i32_0 : i32, i32
  }
  func.func @transform_7(%arg0: i32) -> (i32, i32) {
    %c0_i32 = arith.constant 0 : i32
    %c0_i32_0 = arith.constant 0 : i32
    %c0_i32_1 = arith.constant 0 : i32
    return %c0_i32, %c0_i32_0 : i32, i32
  }
  func.func @transform_8(%arg0: i32) -> (i32, i32) {
    %c0_i32 = arith.constant 0 : i32
    %c0_i32_0 = arith.constant 0 : i32
    %c0_i32_1 = arith.constant 0 : i32
    return %c0_i32, %c0_i32_0 : i32, i32
  }
  func.func @transform_9(%arg0: i32) -> (i32, i32) {
    %c0_i32 = arith.constant 0 : i32
    %c0_i32_0 = arith.constant 0 : i32
    %c0_i32_1 = arith.constant 0 : i32
    return %c0_i32, %c0_i32_0 : i32, i32
  }
  func.func @transform_10(%arg0: i32) -> (i32, i32) {
    %c0_i32 = arith.constant 0 : i32
    %c0_i32_0 = arith.constant 0 : i32
    %c0_i32_1 = arith.constant 0 : i32
    return %c0_i32, %c0_i32_0 : i32, i32
  }
  func.func @transform_11(%arg0: i32) -> (i32, i32) {
    %c0_i32 = arith.constant 0 : i32
    %c0_i32_0 = arith.constant 0 : i32
    %c0_i32_1 = arith.constant 0 : i32
    return %c0_i32, %c0_i32_0 : i32, i32
  }
  func.func @transform_12(%arg0: i32) -> (i32, i32) {
    %c0_i32 = arith.constant 0 : i32
    %c0_i32_0 = arith.constant 0 : i32
    %c0_i32_1 = arith.constant 0 : i32
    return %c0_i32, %c0_i32_0 : i32, i32
  }
  func.func @transform_13(%arg0: i32) -> (i32, i32) {
    %c0_i32 = arith.constant 0 : i32
    %c0_i32_0 = arith.constant 0 : i32
    return %arg0, %c0_i32 : i32, i32
  }
  func.func @transform_14(%arg0: i32) -> (i32, i32) {
    %c0_i32 = arith.constant 0 : i32
    %c0_i32_0 = arith.constant 0 : i32
    return %arg0, %c0_i32 : i32, i32
  }
}

</mosaic_0001>

<bundles_post_ra>
// kernel: torus_ae_forward.1
= control target key start
LH: loop header
LB: loop body
LE: loop exit
PB: predicated region body
PF: predicated region fallthrough
CT: control target
= control target key end

     0   :  { %20 = vsyncpa [#allocation3], 0  ;;  %s2829_s0 = inlined_call_operand.vmem [shape: f32[16,256], index: 0, kind: input, shape index: {}]   ;;  %s2830_s1 = inlined_call_operand.vmem [shape: bf16[256,128], index: 1, kind: input, shape index: {}]   ;;  %s2831_s2 = inlined_call_operand.vmem [shape: f32[1,128], index: 2, kind: input, shape index: {}]   ;;  %s2832_s3 = inlined_call_operand.vmem [shape: bf16[128,64], index: 3, kind: input, shape index: {}]   ;;  %s2833_s4 = inlined_call_operand.vmem [shape: f32[1,64], index: 4, kind: input, shape index: {}]   ;;  %s2834_s5 = inlined_call_operand.vmem [shape: bf16[64,2], index: 5, kind: input, shape index: {}]   ;;  %s2835_s6 = inlined_call_operand.vmem [shape: f32[1,2], index: 6, kind: input, shape index: {}]   ;;  %s2836_s7 = inlined_call_operand.vmem [shape: f32[4,64], index: 7, kind: input, shape index: {}]   ;;  %s2837_s8 = inlined_call_operand.vmem [shape: f32[1,64], index: 8, kind: input, shape index: {}]   ;;  %s2838_s9 = inlined_call_operand.vmem [shape: bf16[64,128], index: 9, kind: input, shape index: {}]   ;;  %s2839_s10 = inlined_call_operand.vmem [shape: f32[1,128], index: 10, kind: input, shape index: {}]   ;;  %s2840_s11 = inlined_call_operand.vmem [shape: bf16[128,256], index: 11, kind: input, shape index: {}]   ;;  %s2841_s12 = inlined_call_operand.vmem [shape: f32[1,256], index: 12, kind: input, shape index: {}]   ;;  %s2842_s13 = inlined_call_operand.hbm [shape: f32[16,256], index: 13, kind: output, shape index: {0}]   ;;  %s2843_s14 = inlined_call_operand.vmem [shape: f32[16,4], index: 14, kind: output, shape index: {1}]  }
   0x1   :  { %22 = vsyncpa [#allocation3 + $0x1], 0  ;;  %s2352_s29 = smov 0   ;;  %s2354_s30 = smov 0  }
   0x2   :  { %s2356_s15 = smov 0   ;;  %s2358_s16 = smov 0  }
   0x3 LB: > { %2850 = sst [smem:[#allocation5_spill]] %s2251_s29  ;;  %s2373_s17 = sadd.s32 4294967295, %s2263_s16   ;;  %s2263_s16 = sphi %s2358_s16, %s2861_s16   ;;  %s2259_s15 = sphi %s2356_s15, %s2863_s15   ;;  %s2255_s30 = sphi %s2354_s30, %s2865_s30   ;;  %s2251_s29 = sphi %s2352_s29, %s2864_s29  }
   0x4   : > { %2851 = sst [smem:[#allocation6_spill]] %s2259_s15  ;;  %s1873_s18 = sadd.s32 4294967294, %s2263_s16  }
   0x5   : > { %2852 = sst [smem:[#allocation7_spill]] %s2263_s16  ;;  %s2377_s19 = sadd.s32 1, %s2263_s16  }
   0x6   : > { %2853 = sst [smem:[#allocation8_spill]] %s2377_s19  ;;  %s313_s20 = sadd.s32 1, %s2259_s15 }
   0x7   : > { %s310_s21 = ssub.s32 %s2263_s16, %s2377_s19  ;;  %p323_p0 = scmp.ne.s32.totalorder %s2259_s15, %s2255_s30 }
   0x8   : > { %p311_p1 = scmp.eq.s32.totalorder %s310_s21, 0  ;;  %p324_p2 = scmp.eq.s32.totalorder %s2373_s17, 1 }
   0x9   : > { %p329_p3 = scmp.ne.s32.totalorder %s2255_s30, %s2251_s29  ;;  %p330_p4 = scmp.eq.s32.totalorder %s1873_s18, 1 }
   0xa   : > { %s2388_s22 = scalar_select %p311_p1, %s2259_s15, %s313_s20  }
   0xb   : > { %p2390_p5 = por %p324_p2, %p323_p0  ;;  %p2394_p6 = por %p330_p4, %p329_p3 }
   0xc   : > { %2854 = sst [smem:[#allocation9_spill]] %s2388_s22  ;;  %p1876_p7 = scmp.ge.s32.totalorder %s2263_s16, 1 }
   0xd   : > { %s2856_s24 = scalar_select %p2394_p6, 1, 0 }
   0xe   : > { %p418_p8 = scmp.lt.s32.totalorder %s2263_s16, 3 }
   0xf   : > { %2857 = sst [smem:[#allocation10_spill]] %s2856_s24 }
  0x10   : > { %p419_p9 = pnand %p1876_p7, %p418_p8 }
  0x11   : > { %v2125_v0 = vld [vmem:[%s2830_s1 + $0x40] sm:$0xff] (!%p419_p9)   ;;  %v2127_v2 = vld [vmem:[%s2830_s1 + $0x48] sm:$0xff] (!%p419_p9)   ;;  %p468_p10 = scmp.lt.s32.totalorder (!%p419_p9), %s2373_s17, 1  ;;  %v2129_v4 = vld [vmem:[%s2830_s1 + $0x50] sm:$0xff] (!%p419_p9)   ;;  %v2265_v21 = vmov (!%p419_p9), 0.0   ;;  %vm2266_vm0 = vmmov (!%p419_p9), 0  }
  0x12   : > { %422 = sbr.rel (%p419_p9) target bundleno = 1681 (0x691), region = 72  ;;  %v2126_v1 = vld [vmem:[%s2830_s1] sm:$0xff] (!%p419_p9)   ;;  %1967 = vmatprep.subr.bf16.mxu0 (!%p419_p9), %v2125_v0  ;;  %v2128_v3 = vld [vmem:[%s2830_s1 + $0x8] sm:$0xff] (!%p419_p9)   ;;  %v2130_v5 = vld [vmem:[%s2830_s1 + $0x10] sm:$0xff] (!%p419_p9)   ;;  %2008 = vmatprep.subr.bf16.mxu1 (!%p419_p9), %v2265_v21  ;;  %v2267_v46 = vmov (!%p419_p9), 683565275  }
  0x13   : > { %1968 = vmatpush3.bf16.msra.mxu0 (!%p419_p9), %v2126_v1  ;;  %v2131_v6 = vld [vmem:[%s2830_s1 + $0x58] sm:$0xff] (!%p419_p9)   ;;  %v2133_v8 = vld [vmem:[%s2830_s1 + $0x60] sm:$0xff] (!%p419_p9)   ;;  %v2135_v10 = vld [vmem:[%s2830_s1 + $0x68] sm:$0xff] (!%p419_p9)   ;;  %2024 = vmatprep.mubr.msk.bf16.mxu1 (!%p419_p9), %vm2266_vm0, %v2265_v21  ;;  %v2268_v48 = vmov (!%p419_p9), 2475754826   ;;  %s459_s26 = sand.u32 (!%p419_p9), 1, %s2255_s30  }
  0x14   : > { %1969 = vmatprep.subr.bf16.mxu0 (!%p419_p9), %v2127_v2  ;;  %v2132_v7 = vld [vmem:[%s2830_s1 + $0x18] sm:$0xff] (!%p419_p9)   ;;  %v2134_v9 = vld [vmem:[%s2830_s1 + $0x20] sm:$0xff] (!%p419_p9)   ;;  %v2136_v12 = vld [vmem:[%s2830_s1 + $0x28] sm:$0xff] (!%p419_p9)   ;;  %v2269_v51 = vmov (!%p419_p9), 2131351028   ;;  %s2276_s25 = smov (!%p419_p9), [#allocation2]  }
  0x15   : > { %v2137_v14 = vld [vmem:[%s2830_s1 + $0x70] sm:$0xff] (!%p419_p9)   ;;  %v2139_v16 = vld [vmem:[%s2830_s1 + $0x78] sm:$0xff] (!%p419_p9)   ;;  %v2141_v20 = vld [vmem:[%s2832_s3] sm:$0xff] (!%p419_p9)   ;;  %v2270_v54 = vmov (!%p419_p9), 2102212464  }
  0x16   : > { %v2138_v15 = vld [vmem:[%s2830_s1 + $0x30] sm:$0xff] (!%p419_p9)   ;;  %v2140_v17 = vld [vmem:[%s2830_s1 + $0x38] sm:$0xff] (!%p419_p9)   ;;  %2009 = vmatpush3.bf16.msra.mxu1 (!%p419_p9), %v2141_v20  ;;  %v2142_v22 = vld [vmem:[%s2832_s3 + $0x8] sm:$0xff] (!%p419_p9)   ;;  %v2271_v57 = vmov (!%p419_p9), 920167782  }
  0x17   : > { %1970 = vmatpush3.bf16.msra.mxu0 (!%p419_p9), %v2128_v3  ;;  %2010 = vmatprep.subr.bf16.mxu1 (!%p419_p9), %v2265_v21  ;;  %v2143_v23 = vld [vmem:[%s2832_s3 + $0x10] sm:$0xff] (!%p419_p9)   ;;  %v2144_v24 = vld [vmem:[%s2832_s3 + $0x18] sm:$0xff] (!%p419_p9)   ;;  %v2145_v25 = vld [vmem:[%s2832_s3 + $0x20] sm:$0xff] (!%p419_p9)   ;;  %v2272_v60 = vmov (!%p419_p9), 1326507024  }
  0x18   : > { %1971 = vmatprep.subr.bf16.mxu0 (!%p419_p9), %v2129_v4  ;;  %v2146_v26 = vld [vmem:[%s2832_s3 + $0x28] sm:$0xff] (!%p419_p9)   ;;  %v2147_v27 = vld [vmem:[%s2832_s3 + $0x30] sm:$0xff] (!%p419_p9)   ;;  %v2148_v28 = vld [vmem:[%s2832_s3 + $0x38] sm:$0xff] (!%p419_p9)  }
  0x19   : > { %s2417_s15 = scalar_select %p468_p10, %s2373_s17, 1  ;;  %v1881_v30 = vld [vmem:[%s2831_s2] ss:$0 sm:$0xff] }
  0x1a   : > { %2011 = vmatpush3.bf16.msra.mxu1 %v2142_v22 }
  0x1b   : > { %s1965_s22 = sshll.u32 %s2417_s15, 4  ;;  %1972 = vmatpush3.bf16.msra.mxu0 %v2130_v5  ;;  %2012 = vmatprep.subr.bf16.mxu1 %v2265_v21  ;;  %s1880_s29 = sshll.u32 %s2417_s15, 3 }
  0x1c   : > { %1973 = vmatprep.subr.bf16.mxu0 %v2131_v6  ;;  %s472_s27 = scalar_lea.vmem %s2829_s0, %s1965_s22  ;;  %s2621_s22 = scalar_lea.vmem %s2843_s14, %s1880_s29 }
  0x1d   : > { %v479_v11 = vld [vmem:[%s472_s27 + $0x8] sm:$0xff]  ;;  %v478_v18 = vld [vmem:[%s472_s27] sm:$0xff]  ;;  %s2275_s15 = smov 2   ;;  %s1877_s29 = sshll.u32 %s459_s26, 4 }
  0x1e   : > { %v481_v13 = vpack.c.bf16 %v479_v11, %v479_v11  ;;  %v480_v19 = vpack.c.bf16 %v478_v18, %v478_v18  ;;  %2013 = vmatpush3.bf16.msra.mxu1 %v2143_v23  ;;  %s2205_s27 = sshll.u32 %s2276_s25, 4  ;;  %s2206_s27 = int_to_ptr.vmem [resolvable:$false] %s2205_s27 }
  0x1f   : > { %1974 = vmatpush3.bf16.msra.mxu0 %v2132_v7  ;;  %2014 = vmatprep.subr.bf16.mxu1 %v2265_v21 }
  0x20   : > { %1975 = vmatprep.subr.bf16.mxu0 %v2133_v8  ;;  %649 = vmatprep.mubr.bf16.mxu0 %v481_v13 }
  0x22   : > { %2015 = vmatpush3.bf16.msra.mxu1 %v2144_v24 }
  0x23   : > { %1976 = vmatpush3.bf16.msra.mxu0 %v2134_v9  ;;  %2016 = vmatprep.subr.bf16.mxu1 %v2265_v21 }
  0x24   : > { %1977 = vmatprep.subr.bf16.mxu0 %v2135_v10 }
  0x26   : > { %2017 = vmatpush3.bf16.msra.mxu1 %v2145_v25 }
  0x27   : > { %1978 = vmatpush3.bf16.msra.mxu0 %v2136_v12  ;;  %2018 = vmatprep.subr.bf16.mxu1 %v2265_v21 }
  0x28   : > { %1979 = vmatprep.subr.bf16.mxu0 %v2137_v14 }
  0x2a   : > { %2019 = vmatpush3.bf16.msra.mxu1 %v2146_v26 }
  0x2b   : > { %1980 = vmatpush3.bf16.msra.mxu0 %v2138_v15  ;;  %2020 = vmatprep.subr.bf16.mxu1 %v2265_v21 }
  0x2c   : > { %1981 = vmatprep.subr.bf16.mxu0 %v2139_v16 }
  0x2e   : > { %2021 = vmatpush3.bf16.msra.mxu1 %v2147_v27 }
  0x2f   : > { %1982 = vmatpush3.bf16.msra.mxu0 %v2140_v17  ;;  %2022 = vmatprep.subr.bf16.mxu1 %v2265_v21 }
  0x32   : > { %650 = vmatmul.mubr.bf16.vlgmr.msra.gmra.mrb[0].mxu0 %v480_v19  ;;  %2023 = vmatpush3.bf16.msra.mxu1 %v2148_v28 }
  0x33   : > { %2028 = vmatprep.subr.bf16.mxu1 %v2265_v21 }
 0x105   : > { %v1983_v29 = vpop.f32.mrb[0].mxu0 }
 0x106   : > { %v1984_v31 = vpop.f32.mrb[1].mxu0 }
 0x107   : > { %v1985_v32 = vadd.f32 %v1984_v31, %v1983_v29  ;;  %v1986_v33 = vpop.f32.mrb[2].mxu0 }
 0x108   : > { %v1987_v34 = vpop.f32.mrb[3].mxu0 }
 0x109   : > { %v2494_v35 = vadd.f32 %v1985_v32, %v1881_v30 }
 0x10b   : > { %v660_v36 = vand.u32 2139095040, %v2494_v35  ;;  %v657_v40 = vand.u32 2147483647, %v2494_v35  ;;  %vm659_vm8 = vcmp.lt.s32.totalorder %v2494_v35, 0  ;;  %vm749_vm13 = vweird.f32 %v2494_v35 }
 0x10d   : > { %v661_v37 = vshrl.u32 %v660_v36, 23  ;;  %v664_v43 = vand.u32 8388607, %v657_v40  ;;  %vm658_vm9 = vcmp.le.f32.partialorder %v657_v40, 0.7853982 }
 0x10f   : > { %v1898_v38 = vadd.s32 4294967169, %v661_v37  ;;  %v665_v62 = vor.u32 8388608, %v664_v43 }
 0x111   : > { %v667_v39 = vadd.s32 1, %v1898_v38  ;;  %v705_v12 = vshll.u32 %v665_v62, 8 }
 0x113   : > { %vm668_vm1 = vcmp.gt.s32.totalorder %v667_v39, 0 }
 0x114   : > { %v669_v41 = vsel %vm668_vm1, %v667_v39, 0 }
 0x115   : > { %v671_v42 = vand.u32 31, %v669_v41  ;;  %v670_v45 = vshrl.u32 %v669_v41, 5 }
 0x117   : > { %v672_v44 = vsub.s32 32, %v671_v42  ;;  %v674_v47 = vshll.u32 %v2267_v46, %v671_v42  ;;  %v677_v49 = vshll.u32 %v2268_v48, %v671_v42  ;;  %v680_v53 = vshll.u32 %v2269_v51, %v671_v42 }
 0x118   : > { %v683_v56 = vshll.u32 %v2270_v54, %v671_v42  ;;  %v686_v59 = vshll.u32 %v2271_v57, %v671_v42  ;;  %vm689_vm2 = vcmp.lt.s32.totalorder %v670_v45, 1  ;;  %vm692_vm3 = vcmp.lt.s32.totalorder %v670_v45, 4 }
 0x119   : > { %v675_v50 = vshrl.u32 %v2268_v48, %v672_v44  ;;  %v678_v52 = vshrl.u32 %v2269_v51, %v672_v44  ;;  %v681_v55 = vshrl.u32 %v2270_v54, %v672_v44  ;;  %v684_v58 = vshrl.u32 %v2271_v57, %v672_v44 }
 0x11a   : > { %v687_v61 = vshrl.u32 %v2272_v60, %v672_v44  ;;  %v673_v7 = vshrl.u32 %v2267_v46, %v672_v44  ;;  %vm691_vm4 = vcmp.lt.s32.totalorder %v670_v45, 3  ;;  %vm690_vm5 = vcmp.lt.s32.totalorder %v670_v45, 2 }
 0x11b   : > { %v676_v63 = vor.u32 %v675_v50, %v674_v47  ;;  %v679_v0 = vor.u32 %v678_v52, %v677_v49  ;;  %v682_v1 = vor.u32 %v681_v55, %v680_v53  ;;  %v685_v2 = vor.u32 %v684_v58, %v683_v56 }
 0x11c   : > { %v688_v3 = vor.u32 %v687_v61, %v686_v59 }
 0x11d   : > { %v694_v4 = vsel %vm692_vm3, %v682_v1, 2102212464  ;;  %v697_v5 = vsel %vm689_vm2, %v676_v63, %v679_v0  ;;  %v701_v6 = vsel %vm689_vm2, %v679_v0, %v682_v1  ;;  %v698_v8 = vsel %vm692_vm3, %v685_v2, 920167782 }
 0x11e   : > { %v702_v9 = vsel %vm692_vm3, %v688_v3, 1326507024  ;;  %v699_v10 = vsel %vm691_vm4, %v682_v1, %v698_v8  ;;  %v693_v13 = vsel %vm689_vm2, %v673_v7, %v676_v63  ;;  %v695_v14 = vsel %vm691_vm4, %v679_v0, %v694_v4  ;;  %v2149_v8 = vld [vmem:[%s2834_s5] sm:$0xff]  }
 0x11f   : > { %v703_v11 = vsel %vm691_vm4, %v685_v2, %v702_v9  ;;  %v700_v15 = vsel %vm690_vm5, %v697_v5, %v699_v10  ;;  %v696_v22 = vsel %vm690_vm5, %v693_v13, %v695_v14  ;;  %v2150_v9 = vld [vmem:[%s2834_s5 + $0x8] sm:$0xff]   ;;  %v2152_v10 = vld [vmem:[%s2834_s5 + $0x18] sm:$0xff]  }
 0x120   : > { %v704_v16 = vsel %vm690_vm5, %v701_v6, %v703_v11  ;;  %v2514_v19 = vmul.u32.u64.low %v705_v12, %v700_v15  ;;  %v2515_v20 = vmul.u32.u64.high %v705_v12, %v700_v15, %v2514_v19  ;;  %v712_v24 = vmul.u32 %v705_v12, %v696_v22  ;;  %v1902_v11 = vld [vmem:[%s2833_s4] ss:$0 sm:$0xff] }
 0x121   : > { %v2511_v17 = vmul.u32.u64.low %v705_v12, %v704_v16  ;;  %v2512_v18 = vmul.u32.u64.high %v705_v12, %v704_v16, %v2511_v17 }
 0x122   : > { %v715_v23 = vadd.s32 1, %v2515_v20 }
 0x123   : > { %vm714_vm6 = vc.u32 %v2512_v18, %v2514_v19  ;;  %v713_v37 = vadd.s32 %v2514_v19, %v2512_v18 }
 0x124   : > { %v716_v25 = vsel %vm714_vm6, %v715_v23, %v2515_v20 }
 0x125   : > { %v717_v26 = vadd.s32 %v716_v25, %v712_v24 }
 0x127   : > { %v718_v27 = vadd.s32 536870912, %v717_v26 }
 0x129   : > { %v719_v28 = vshrl.u32 %v718_v27, 30 }
 0x12b   : > { %v720_v29 = vshll.u32 %v719_v28, 30  ;;  %v743_v53 = vsub.s32 4, %v719_v28 }
 0x12d   : > { %v721_v30 = vsub.s32 %v717_v26, %v720_v29  ;;  %v744_v58 = vsel %vm659_vm8, %v743_v53, %v719_v28 }
 0x12e   : > { %v746_v61 = vsel %vm658_vm9, 0, %v744_v58 }
 0x12f   : > { %v723_v31 = vsub.s32 0, %v721_v30  ;;  %v750_v62 = vadd.s32 3, %v746_v61 }
 0x131   : > { %v1899_v32 = vmin.u32 %v723_v31, %v721_v30  ;;  %v751_v63 = vand.u32 3, %v750_v62 }
 0x133   : > { %v725_v33 = vclz %v1899_v32  ;;  %vm756_vm10 = vcmp.eq.s32.totalorder %v751_v63, 2  ;;  %vm753_vm11 = vcmp.eq.s32.totalorder %v751_v63, 0  ;;  %vm752_vm12 = vcmp.lt.s32.totalorder %v751_v63, 2 }
 0x135   : > { %v1900_v34 = vadd.s32 4294967294, %v725_v33 }
 0x137   : > { %vm1901_vm7 = vcmp.lt.s32.totalorder %v1900_v34, 0 }
 0x138   : > { %v728_v36 = vsel %vm1901_vm7, 0, %v1900_v34 }
 0x139   : > { %v729_v38 = vsub.s32 32, %v728_v36  ;;  %v733_v39 = vsub.s32 4294967266, %v728_v36  ;;  %v730_v41 = vshll.u32 %v721_v30, %v728_v36 }
 0x13b   : > { %v731_v42 = vshrl.u32 %v713_v37, %v729_v38  ;;  %v734_v43 = vadd.s32 127, %v733_v39 }
 0x13d   : > { %v732_v44 = vor.u32 %v731_v42, %v730_v41  ;;  %v735_v45 = vshll.u32 %v734_v43, 23 }
 0x13f   : > { %v736_v47 = vor.u32 4788187, %v735_v45  ;;  %v739_v50 = vcvt.s32.f32 %v732_v44 }
 0x141   : > { %v737_v49 = vand.u32 2147483647, %v736_v47 }
 0x143   : > { %v740_v52 = vmul.f32 %v739_v50, %v737_v49 }
 0x145   : > { %v741_v55 = vxor.u32 2147483648, %v740_v52 }
 0x147   : > { %v742_v56 = vsel %vm659_vm8, %v741_v55, %v740_v52 }
 0x148   : > { %v745_v59 = vsel %vm658_vm9, %v2494_v35, %v742_v56  ;;  %v2151_v35 = vld [vmem:[%s2834_s5 + $0x10] sm:$0xff]  }
 0x149   : > { %2181 = vcosq.f32 %v745_v59 }
 0x14a   : > { %2183 = vsinq.f32 %v745_v59 }
 0x153   : > { %v2182_v0 = vpop.eup %2181 }
 0x154   : > { %v2184_v1 = vpop.eup %2183  ;;  %v757_v2 = vxor.u32 2147483648, %v2182_v0 }
 0x155   : > { %v754_v3 = vxor.u32 2147483648, %v2184_v1 }
 0x156   : > { %v758_v4 = vsel %vm756_vm10, %v757_v2, %v2184_v1 }
 0x157   : > { %v755_v5 = vsel %vm753_vm11, %v2182_v0, %v754_v3 }
 0x158   : > { %v759_v40 = vsel %vm752_vm12, %v755_v5, %v758_v4  ;;  %vm1017_vm12 = vcmask 523264  }
 0x159   : > { %v760_v6 = vsel %vm749_vm13, nan, %v759_v40 }
 0x15a   : > { %v761_v7 = vpack.c.bf16 %v760_v6, %v760_v6 }
 0x15c   : > { %2025 = vmatmul.mubr.bf16.vlgmr.msra.gmra.mrb[0].mxu1 %v761_v7 }
 0x15d   : > { %2036 = vmatprep.mubr.msk.bf16.mxu1 %vm2266_vm0, %v2265_v21  ;;  %2029 = vmatpush3.bf16.msra.mxu1 %v2149_v8 }
 0x15e   : > { %2030 = vmatprep.subr.bf16.mxu1 %v2265_v21 }
 0x161   : > { %2031 = vmatpush3.bf16.msra.mxu1 %v2150_v9 }
 0x162   : > { %2032 = vmatprep.subr.bf16.mxu1 %v2265_v21 }
 0x165   : > { %2033 = vmatpush3.bf16.msra.mxu1 %v2151_v35 }
 0x166   : > { %2034 = vmatprep.subr.bf16.mxu1 %v2265_v21 }
 0x169   : > { %2035 = vmatpush3.bf16.msra.mxu1 %v2152_v10 }
 0x16a   : > { %2040 = vmatprep.subr.bf16.mxu1 %v2265_v21 }
 0x22f   : > { %v867_v12 = vpop.f32.mrb[0].mxu1 }
 0x230   : > { %v2547_v13 = vadd.f32 %v1902_v11, %v867_v12  ;;  %v2026_v14 = vpop.f32.mrb[1].mxu1 }
 0x231   : > { %v870_v15 = vpop.f32.mrb[2].mxu1 }
 0x232   : > { %v876_v16 = vand.u32 2139095040, %v2547_v13  ;;  %v2027_v17 = vpop.f32.mrb[3].mxu1  ;;  %v873_v22 = vand.u32 2147483647, %v2547_v13  ;;  %vm875_vm6 = vcmp.lt.s32.totalorder %v2547_v13, 0  ;;  %vm965_vm11 = vweird.f32 %v2547_v13 }
 0x234   : > { %v877_v18 = vshrl.u32 %v876_v16, 23  ;;  %v880_v25 = vand.u32 8388607, %v873_v22  ;;  %vm874_vm7 = vcmp.le.f32.partialorder %v873_v22, 0.7853982 }
 0x236   : > { %v1911_v19 = vadd.s32 4294967169, %v877_v18  ;;  %v881_v39 = vor.u32 8388608, %v880_v25 }
 0x238   : > { %v883_v20 = vadd.s32 1, %v1911_v19  ;;  %v921_v59 = vshll.u32 %v881_v39, 8 }
 0x23a   : > { %vm884_vm14 = vcmp.gt.s32.totalorder %v883_v20, 0 }
 0x23b   : > { %v885_v23 = vsel %vm884_vm14, %v883_v20, 0 }
 0x23c   : > { %v887_v24 = vand.u32 31, %v885_v23  ;;  %v886_v27 = vshrl.u32 %v885_v23, 5 }
 0x23e   : > { %v888_v26 = vsub.s32 32, %v887_v24  ;;  %v890_v28 = vshll.u32 %v2267_v46, %v887_v24  ;;  %v893_v29 = vshll.u32 %v2268_v48, %v887_v24  ;;  %v896_v32 = vshll.u32 %v2269_v51, %v887_v24 }
 0x23f   : > { %v899_v34 = vshll.u32 %v2270_v54, %v887_v24  ;;  %v902_v37 = vshll.u32 %v2271_v57, %v887_v24  ;;  %vm905_vm15 = vcmp.lt.s32.totalorder %v886_v27, 1  ;;  %vm908_vm1 = vcmp.lt.s32.totalorder %v886_v27, 4 }
 0x240   : > { %v891_v30 = vshrl.u32 %v2268_v48, %v888_v26  ;;  %v894_v31 = vshrl.u32 %v2269_v51, %v888_v26  ;;  %v897_v33 = vshrl.u32 %v2270_v54, %v888_v26  ;;  %v900_v36 = vshrl.u32 %v2271_v57, %v888_v26 }
 0x241   : > { %v903_v38 = vshrl.u32 %v2272_v60, %v888_v26  ;;  %v889_v52 = vshrl.u32 %v2267_v46, %v888_v26  ;;  %vm907_vm2 = vcmp.lt.s32.totalorder %v886_v27, 3  ;;  %vm906_vm3 = vcmp.lt.s32.totalorder %v886_v27, 2 }
 0x242   : > { %v892_v41 = vor.u32 %v891_v30, %v890_v28  ;;  %v895_v42 = vor.u32 %v894_v31, %v893_v29  ;;  %v898_v43 = vor.u32 %v897_v33, %v896_v32  ;;  %v901_v44 = vor.u32 %v900_v36, %v899_v34 }
 0x243   : > { %v904_v45 = vor.u32 %v903_v38, %v902_v37 }
 0x244   : > { %v910_v47 = vsel %vm908_vm1, %v898_v43, 2102212464  ;;  %v913_v49 = vsel %vm905_vm15, %v892_v41, %v895_v42  ;;  %v917_v50 = vsel %vm905_vm15, %v895_v42, %v898_v43  ;;  %v914_v53 = vsel %vm908_vm1, %v901_v44, 920167782 }
 0x245   : > { %v918_v55 = vsel %vm908_vm1, %v904_v45, 1326507024  ;;  %v915_v56 = vsel %vm907_vm2, %v898_v43, %v914_v53  ;;  %v909_v61 = vsel %vm905_vm15, %v889_v52, %v892_v41  ;;  %v911_v62 = vsel %vm907_vm2, %v895_v42, %v910_v47 }
 0x246   : > { %v919_v58 = vsel %vm907_vm2, %v901_v44, %v918_v55  ;;  %v916_v63 = vsel %vm906_vm3, %v913_v49, %v915_v56  ;;  %v912_v5 = vsel %vm906_vm3, %v909_v61, %v911_v62  ;;  %v2273_v53 = vmov 1   ;;  %v1915_v56 = vld [vmem:[%s2835_s6] ss:$0 sm:$0xff] }
 0x247   : > { %v920_v0 = vsel %vm906_vm3, %v917_v50, %v919_v58  ;;  %v2567_v3 = vmul.u32.u64.low %v921_v59, %v916_v63  ;;  %v2568_v4 = vmul.u32.u64.high %v921_v59, %v916_v63, %v2567_v3  ;;  %v928_v6 = vmul.u32 %v921_v59, %v912_v5  ;;  %2123 = vset.pattern.permute.xlu1 %v2273_v53 }
 0x248   : > { %v2564_v1 = vmul.u32.u64.low %v921_v59, %v920_v0  ;;  %v2565_v2 = vmul.u32.u64.high %v921_v59, %v920_v0, %v2564_v1  ;;  %v2274_v55 = vmov 0  }
 0x249   : > { %v931_v40 = vadd.s32 1, %v2568_v4  ;;  %2122 = vset.pattern.permute.xlu0 %v2274_v55  ;;  %1757 = vmatprep.mubr.bf16.mxu0 %v2274_v55 }
 0x24a   : > { %vm930_vm4 = vc.u32 %v2565_v2, %v2567_v3  ;;  %v929_v18 = vadd.s32 %v2567_v3, %v2565_v2 }
 0x24b   : > { %v932_v7 = vsel %vm930_vm4, %v931_v40, %v2568_v4 }
 0x24c   : > { %v933_v8 = vadd.s32 %v932_v7, %v928_v6 }
 0x24e   : > { %v934_v9 = vadd.s32 536870912, %v933_v8 }
 0x250   : > { %v935_v35 = vshrl.u32 %v934_v9, 30 }
 0x252   : > { %v936_v10 = vshll.u32 %v935_v35, 30  ;;  %v959_v32 = vsub.s32 4, %v935_v35 }
 0x254   : > { %v937_v11 = vsub.s32 %v933_v8, %v936_v10  ;;  %v960_v36 = vsel %vm875_vm6, %v959_v32, %v935_v35 }
 0x255   : > { %v962_v38 = vsel %vm874_vm7, 0, %v960_v36 }
 0x256   : > { %v939_v12 = vsub.s32 0, %v937_v11  ;;  %v966_v39 = vadd.s32 3, %v962_v38 }
 0x258   : > { %v1912_v14 = vmin.u32 %v939_v12, %v937_v11  ;;  %v967_v41 = vand.u32 3, %v966_v39 }
 0x25a   : > { %v941_v15 = vclz %v1912_v14  ;;  %vm972_vm8 = vcmp.eq.s32.totalorder %v967_v41, 2  ;;  %vm969_vm9 = vcmp.eq.s32.totalorder %v967_v41, 0  ;;  %vm968_vm10 = vcmp.lt.s32.totalorder %v967_v41, 2 }
 0x25c   : > { %v1913_v16 = vadd.s32 4294967294, %v941_v15 }
 0x25e   : > { %vm1914_vm5 = vcmp.lt.s32.totalorder %v1913_v16, 0 }
 0x25f   : > { %v944_v17 = vsel %vm1914_vm5, 0, %v1913_v16 }
 0x260   : > { %v945_v19 = vsub.s32 32, %v944_v17  ;;  %v949_v20 = vsub.s32 4294967266, %v944_v17  ;;  %v946_v23 = vshll.u32 %v937_v11, %v944_v17 }
 0x262   : > { %v947_v24 = vshrl.u32 %v929_v18, %v945_v19  ;;  %v950_v25 = vadd.s32 127, %v949_v20 }
 0x264   : > { %v948_v26 = vor.u32 %v947_v24, %v946_v23  ;;  %v951_v27 = vshll.u32 %v950_v25, 23 }
 0x266   : > { %v952_v28 = vor.u32 4788187, %v951_v27  ;;  %v955_v30 = vcvt.s32.f32 %v948_v26 }
 0x268   : > { %v953_v29 = vand.u32 2147483647, %v952_v28 }
 0x26a   : > { %v956_v31 = vmul.f32 %v955_v30, %v953_v29 }
 0x26c   : > { %v957_v33 = vxor.u32 2147483648, %v956_v31 }
 0x26e   : > { %v958_v34 = vsel %vm875_vm6, %v957_v33, %v956_v31 }
 0x26f   : > { %v961_v37 = vsel %vm874_vm7, %v2547_v13, %v958_v34  ;;  %vm1268_vm7 = vcmask 15360  }
 0x270   : > { %2185 = vcosq.f32 %v961_v37 }
 0x271   : > { %2187 = vsinq.f32 %v961_v37 }
 0x27a   : > { %v2186_v42 = vpop.eup %2185 }
 0x27b   : > { %v2188_v43 = vpop.eup %2187  ;;  %v973_v44 = vxor.u32 2147483648, %v2186_v42 }
 0x27c   : > { %v970_v45 = vxor.u32 2147483648, %v2188_v43 }
 0x27d   : > { %v974_v47 = vsel %vm972_vm8, %v973_v44, %v2188_v43 }
 0x27e   : > { %v971_v49 = vsel %vm969_vm9, %v2186_v42, %v970_v45 }
 0x27f   : > { %v975_v22 = vsel %vm968_vm10, %v971_v49, %v974_v47 }
 0x280   : > { %v976_v50 = vsel %vm965_vm11, nan, %v975_v22 }
 0x281   : > { %v977_v52 = vpack.c.bf16 %v976_v50, %v976_v50 }
 0x283   : > { %2037 = vmatmul.mubr.msk.bf16.vlgmr.msra.gmra.mrb[4].mxu1 %vm1017_vm12, %v977_v52 }
 0x284   : > { %2048 = vmatprep.mubr.msk.bf16.mxu1 %vm2266_vm0, %v2265_v21 }
 0x356   : > { %v1055_v13 = vpop.f32.mrb[4].mxu1 }
 0x357   : > { %v2586_v58 = vadd.f32 %v1915_v56, %v1055_v13  ;;  %v2038_v59 = vpop.f32.mrb[5].mxu1 }
 0x358   : > { %v1058_v61 = vpop.f32.mrb[6].mxu1 }
 0x359   : > { %v1064_v62 = vand.u32 2139095040, %v2586_v58  ;;  %v2039_v63 = vpop.f32.mrb[7].mxu1  ;;  %v1061_v3 = vand.u32 2147483647, %v2586_v58  ;;  %vm1063_vm4 = vcmp.lt.s32.totalorder %v2586_v58, 0 }
 0x35b   : > { %v1065_v0 = vshrl.u32 %v1064_v62, 23  ;;  %v1068_v40 = vand.u32 8388607, %v1061_v3  ;;  %vm1062_vm5 = vcmp.le.f32.partialorder %v1061_v3, 0.7853982 }
 0x35d   : > { %v1921_v1 = vadd.s32 4294967169, %v1065_v0  ;;  %v1069_v18 = vor.u32 8388608, %v1068_v40 }
 0x35f   : > { %v1071_v2 = vadd.s32 1, %v1921_v1  ;;  %v1109_v34 = vshll.u32 %v1069_v18, 8 }
 0x361   : > { %vm1072_vm0 = vcmp.gt.s32.totalorder %v1071_v2, 0 }
 0x362   : > { %v1073_v4 = vsel %vm1072_vm0, %v1071_v2, 0 }
 0x363   : > { %v1075_v5 = vand.u32 31, %v1073_v4  ;;  %v1074_v7 = vshrl.u32 %v1073_v4, 5 }
 0x365   : > { %v1076_v6 = vsub.s32 32, %v1075_v5  ;;  %v1078_v8 = vshll.u32 %v2267_v46, %v1075_v5  ;;  %v1081_v9 = vshll.u32 %v2268_v48, %v1075_v5  ;;  %v1084_v11 = vshll.u32 %v2269_v51, %v1075_v5 }
 0x366   : > { %v1087_v14 = vshll.u32 %v2270_v54, %v1075_v5  ;;  %v1090_v16 = vshll.u32 %v2271_v57, %v1075_v5  ;;  %vm1093_vm13 = vcmp.lt.s32.totalorder %v1074_v7, 1  ;;  %vm1096_vm14 = vcmp.lt.s32.totalorder %v1074_v7, 4 }
 0x367   : > { %v1079_v35 = vshrl.u32 %v2268_v48, %v1076_v6  ;;  %v1082_v10 = vshrl.u32 %v2269_v51, %v1076_v6  ;;  %v1085_v12 = vshrl.u32 %v2270_v54, %v1076_v6  ;;  %v1088_v15 = vshrl.u32 %v2271_v57, %v1076_v6 }
 0x368   : > { %v1091_v17 = vshrl.u32 %v2272_v60, %v1076_v6  ;;  %v1077_v29 = vshrl.u32 %v2267_v46, %v1076_v6  ;;  %vm1095_vm15 = vcmp.lt.s32.totalorder %v1074_v7, 3  ;;  %vm1094_vm1 = vcmp.lt.s32.totalorder %v1074_v7, 2 }
 0x369   : > { %v1080_v19 = vor.u32 %v1079_v35, %v1078_v8  ;;  %v1083_v20 = vor.u32 %v1082_v10, %v1081_v9  ;;  %v1086_v23 = vor.u32 %v1085_v12, %v1084_v11  ;;  %v1089_v24 = vor.u32 %v1088_v15, %v1087_v14 }
 0x36a   : > { %v1092_v25 = vor.u32 %v1091_v17, %v1090_v16 }
 0x36b   : > { %v1098_v26 = vsel %vm1096_vm14, %v1086_v23, 2102212464  ;;  %v1101_v27 = vsel %vm1093_vm13, %v1080_v19, %v1083_v20  ;;  %v1105_v28 = vsel %vm1093_vm13, %v1083_v20, %v1086_v23  ;;  %v1102_v30 = vsel %vm1096_vm14, %v1089_v24, 920167782 }
 0x36c   : > { %v1106_v31 = vsel %vm1096_vm14, %v1092_v25, 1326507024  ;;  %v1103_v32 = vsel %vm1095_vm15, %v1086_v23, %v1102_v30  ;;  %v1097_v36 = vsel %vm1093_vm13, %v1077_v29, %v1080_v19  ;;  %v1099_v37 = vsel %vm1095_vm15, %v1083_v20, %v1098_v26 }
 0x36d   : > { %v1107_v33 = vsel %vm1095_vm15, %v1089_v24, %v1106_v31  ;;  %v1104_v38 = vsel %vm1094_vm1, %v1101_v27, %v1103_v32  ;;  %v1100_v45 = vsel %vm1094_vm1, %v1097_v36, %v1099_v37  ;;  %vm1153_vm13 = vweird.f32 %v2586_v58  ;;  %v2153_v36 = vld [vmem:[%s2838_s9] sm:$0xff]   ;;  %v2155_v37 = vld [vmem:[%s2838_s9 + $0x10] sm:$0xff]  }
 0x36e   : > { %v1108_v39 = vsel %vm1094_vm1, %v1105_v28, %v1107_v33  ;;  %v2606_v43 = vmul.u32.u64.low %v1109_v34, %v1104_v38  ;;  %v2607_v44 = vmul.u32.u64.high %v1109_v34, %v1104_v38, %v2606_v43  ;;  %v1116_v49 = vmul.u32 %v1109_v34, %v1100_v45  ;;  %2041 = vmatpush3.bf16.msra.mxu1 %v2153_v36 }
 0x36f   : > { %v2603_v41 = vmul.u32.u64.low %v1109_v34, %v1108_v39  ;;  %v2604_v42 = vmul.u32.u64.high %v1109_v34, %v1108_v39, %v2603_v41  ;;  %2042 = vmatprep.subr.bf16.mxu1 %v2265_v21  ;;  %v1283_v38 = vlaneseq  ;;  %vm1274_vm14 = vcmask 31760  }
 0x370   : > { %v1119_v47 = vadd.s32 1, %v2607_v44 }
 0x371   : > { %vm1118_vm2 = vc.u32 %v2604_v42, %v2606_v43  ;;  %v1117_v1 = vadd.s32 %v2606_v43, %v2604_v42  ;;  %v2642_v39 = vshrl.u32 %v1283_v38, 7  ;;  %v1276_v42 = vld [vmem:[%s2836_s7] sm:$0xf] }
 0x372   : > { %v1120_v22 = vsel %vm1118_vm2, %v1119_v47, %v2607_v44 }
 0x373   : > { %v1121_v50 = vadd.s32 %v1120_v22, %v1116_v49  ;;  %v1285_v41 = vsub.s32 0, %v2642_v39  ;;  %v1301_v44 = vsub.s32 2, %v2642_v39  ;;  %v1311_v45 = vsub.s32 1, %v2642_v39 }
 0x374   : > { %v1321_v22 = vsub.s32 3, %v2642_v39 }
 0x375   : > { %v1122_v52 = vadd.s32 536870912, %v1121_v50  ;;  %v1286_v43 = vrot.slane %v1276_v42, %v1285_v41 }
 0x377   : > { %v1123_v55 = vshrl.u32 %v1122_v52, 30  ;;  %v1929_v52 = vld [vmem:[%s2837_s8] ss:$0 sm:$0xff] }
 0x379   : > { %v1124_v56 = vshll.u32 %v1123_v55, 30  ;;  %v1147_v12 = vsub.s32 4, %v1123_v55 }
 0x37b   : > { %v1125_v13 = vsub.s32 %v1121_v50, %v1124_v56  ;;  %v1148_v16 = vsel %vm1063_vm4, %v1147_v12, %v1123_v55  ;;  %v1302_v50 = vrot.slane %v1276_v42, %v1301_v44  ;;  %v1312_v55 = vrot.slane %v1276_v42, %v1311_v45 }
 0x37c   : > { %v1150_v18 = vsel %vm1062_vm5, 0, %v1148_v16 }
 0x37d   : > { %v1127_v59 = vsub.s32 0, %v1125_v13  ;;  %v1257_v19 = vadd.s32 3, %v1150_v18  ;;  %v1154_v20 = vand.u32 3, %v1150_v18 }
 0x37f   : > { %v1922_v61 = vmin.u32 %v1127_v59, %v1125_v13  ;;  %v1258_v23 = vand.u32 3, %v1257_v19  ;;  %vm1159_vm6 = vcmp.eq.s32.totalorder %v1154_v20, 2  ;;  %vm1156_vm9 = vcmp.eq.s32.totalorder %v1154_v20, 0 }
 0x380   : > { %vm1155_vm11 = vcmp.lt.s32.totalorder %v1154_v20, 2  ;;  %v1322_v59 = vrot.slane %v1276_v42, %v1321_v22 }
 0x381   : > { %v1129_v62 = vclz %v1922_v61  ;;  %vm1263_vm8 = vcmp.eq.s32.totalorder %v1258_v23, 2  ;;  %vm1260_vm10 = vcmp.eq.s32.totalorder %v1258_v23, 0  ;;  %vm1259_vm0 = vcmp.lt.s32.totalorder %v1258_v23, 2 }
 0x383   : > { %v1923_v63 = vadd.s32 4294967294, %v1129_v62 }
 0x385   : > { %vm1924_vm3 = vcmp.lt.s32.totalorder %v1923_v63, 0 }
 0x386   : > { %v1132_v0 = vsel %vm1924_vm3, 0, %v1923_v63 }
 0x387   : > { %v1133_v2 = vsub.s32 32, %v1132_v0  ;;  %v1137_v4 = vsub.s32 4294967266, %v1132_v0  ;;  %v1134_v5 = vshll.u32 %v1125_v13, %v1132_v0 }
 0x389   : > { %v1135_v40 = vshrl.u32 %v1117_v1, %v1133_v2  ;;  %v1138_v6 = vadd.s32 127, %v1137_v4 }
 0x38b   : > { %v1136_v7 = vor.u32 %v1135_v40, %v1134_v5  ;;  %v1139_v8 = vshll.u32 %v1138_v6, 23 }
 0x38d   : > { %v1140_v9 = vor.u32 4788187, %v1139_v8  ;;  %v1143_v10 = vcvt.s32.f32 %v1136_v7 }
 0x38f   : > { %v1141_v35 = vand.u32 2147483647, %v1140_v9 }
 0x391   : > { %v1144_v11 = vmul.f32 %v1143_v10, %v1141_v35 }
 0x393   : > { %v1145_v14 = vxor.u32 2147483648, %v1144_v11 }
 0x395   : > { %v1146_v15 = vsel %vm1063_vm4, %v1145_v14, %v1144_v11 }
 0x396   : > { %v1149_v17 = vsel %vm1062_vm5, %v2586_v58, %v1146_v15  ;;  %v2154_v58 = vld [vmem:[%s2838_s9 + $0x8] sm:$0xff]  }
 0x397   : > { %2189 = vcosq.f32 %v1149_v17  ;;  %2043 = vmatpush3.bf16.msra.mxu1 %v2154_v58 }
 0x398   : > { %2191 = vsinq.f32 %v1149_v17  ;;  %2044 = vmatprep.subr.bf16.mxu1 %v2265_v21 }
 0x39b   : > { %2045 = vmatpush3.bf16.msra.mxu1 %v2155_v37 }
 0x39c   : > { %2046 = vmatprep.subr.bf16.mxu1 %v2265_v21 }
 0x3a1   : > { %v2190_v24 = vpop.eup %2189 }
 0x3a2   : > { %v2192_v25 = vpop.eup %2191  ;;  %v1160_v26 = vxor.u32 2147483648, %v2190_v24 }
 0x3a3   : > { %v1157_v27 = vxor.u32 2147483648, %v2192_v25 }
 0x3a4   : > { %v1161_v28 = vsel %vm1159_vm6, %v1160_v26, %v2192_v25  ;;  %v1265_v3 = vsel %vm1263_vm8, %v1160_v26, %v2192_v25 }
 0x3a5   : > { %v1158_v29 = vsel %vm1156_vm9, %v2190_v24, %v1157_v27  ;;  %v1262_v30 = vsel %vm1260_vm10, %v2190_v24, %v1157_v27 }
 0x3a6   : > { %v1162_v31 = vsel %vm1155_vm11, %v1158_v29, %v1161_v28  ;;  %v1266_v32 = vsel %vm1259_vm0, %v1262_v30, %v1265_v3 }
 0x3a7   : > { %v1163_v33 = vsel %vm1153_vm13, nan, %v1162_v31  ;;  %v1267_v34 = vsel %vm1153_vm13, nan, %v1266_v32 }
 0x3a8   : > { %1306 = vperm.xlu1 %2123, %v1163_v33   ;;  %1269 = vst.msk [vmem:[%s2621_s22] sm:$0xff] %vm1268_vm7, %v1163_v33  ;;  %1280 = vperm.xlu0 %2122, %v1163_v33  }
 0x3ac   : > { %1316 = vperm.xlu1 %2123, %v1267_v34   ;;  %1296 = vperm.xlu0 %2122, %v1267_v34  }
 0x3b0   : > { %1271 = vrot.lane.b32.xlu0 %v1267_v34, %s2275_s15  ;;  %s1966_s15 = sshll.u32 %s2373_s17, 8  ;;  %s1769_s17 = scalar_lea.sflag [#allocation3], %s459_s26 }
 0x3b1   : > { %2124 = vset.pattern.permute.xlu0 %v2273_v53  ;;  %v2156_v53 = vld [vmem:[%s2838_s9 + $0x18] sm:$0xff]   ;;  %s2787_s19 = scalar_lea.hbm %s2842_s13, %s1966_s15 }
 0x3b2   : > { %2047 = vmatpush3.bf16.msra.mxu1 %v2156_v53 }
 0x427   : > { %v1307_v47 = vpop.permute.xlu1 %1306  ;;  %v1281_v49 = vpop.permute.xlu0 %1280 }
 0x428   : > { %v1287_v21 = vmul.f32 %v1286_v43, %v1281_v49  ;;  %v1313_v63 = vmul.f32 %v1312_v55, %v1307_v47 }
 0x42a   : > { %v1294_v13 = vadd.f32 %v1929_v52, %v1287_v21 }
 0x42b   : > { %v1297_v56 = vpop.permute.xlu0 %1296  ;;  %v1317_v62 = vpop.permute.xlu1 %1316 }
 0x42c   : > { %v1303_v61 = vmul.f32 %v1302_v50, %v1297_v56  ;;  %v1323_v2 = vmul.f32 %v1322_v59, %v1317_v62 }
 0x42e   : > { %v1304_v0 = vadd.f32 %v1303_v61, %v1294_v13 }
 0x42f   : > { %v1272_v1 = vpop.permute.xlu0 %1271 }
 0x430   : > { %v1314_v4 = vadd.f32 %v1313_v63, %v1304_v0  ;;  %1275 = vst.msk [vmem:[%s2621_s22] sm:$0xff] %vm1274_vm14, %v1272_v1  ;;  %s461_s22 = scalar_lea.vmem [#allocation2], %s1877_s29  ;;  %s2207_s29 = scalar_lea.vmem %s2206_s27, 512 }
 0x431   : > { %s1787_s28 = sshll.u32 %s461_s22, 4  ;;  %s2789_s28 = int_to_ptr.vmem [resolvable:$true] %s1787_s28 }
 0x432   : > { %v2659_v5 = vadd.f32 %v1323_v2, %v1314_v4  ;;  %s2201_s21 = scalar_lea.vmem %s2789_s28, 256  ;;  %p2208_p0 = scmp.lt.s32.totalorder %s2789_s28, %s2206_s27 }
 0x433   : > { %p2202_p11 = scmp.ne.s32.totalorder %s2789_s28, %s2201_s21  ;;  %p2209_p1 = scmp.lt.s32.totalorder %s2207_s29, %s2201_s21 }
 0x434   : > { %v1328_v40 = vand.u32 2139095040, %v2659_v5  ;;  %v1325_v9 = vand.u32 2147483647, %v2659_v5  ;;  %vm1327_vm7 = vcmp.lt.s32.totalorder %v2659_v5, 0  ;;  %vm1417_vm0 = vweird.f32 %v2659_v5 }
 0x435   : > { %p2203_p12 = pnand %p2202_p11, %p2390_p5  ;;  %p2210_p2 = por %p2209_p1, %p2208_p0 }
 0x436   : > { %v1329_v6 = vshrl.u32 %v1328_v40, 23  ;;  %v1332_v11 = vand.u32 8388607, %v1325_v9  ;;  %vm1326_vm8 = vcmp.le.f32.partialorder %v1325_v9, 0.7853982 }
 0x437   : > { %p2204_p13 = pneg %p2203_p12 }
 0x438   : > { %v1930_v7 = vadd.s32 4294967169, %v1329_v6  ;;  %v1333_v27 = vor.u32 8388608, %v1332_v11 }
 0x439   : > { %p2211_p3 = pnand %p2210_p2, %p2204_p13 }
 0x43a   : > { %v1335_v8 = vadd.s32 1, %v1930_v7  ;;  %v1373_v42 = vshll.u32 %v1333_v27, 8 }
 0x43c   : > { %vm1336_vm15 = vcmp.gt.s32.totalorder %v1335_v8, 0 }
 0x43d   : > { %v1337_v35 = vsel %vm1336_vm15, %v1335_v8, 0 }
 0x43e   : > { %v1339_v10 = vand.u32 31, %v1337_v35  ;;  %v1338_v14 = vshrl.u32 %v1337_v35, 5 }
 0x440   : > { %v1340_v12 = vsub.s32 32, %v1339_v10  ;;  %v1342_v15 = vshll.u32 %v2267_v46, %v1339_v10  ;;  %v1345_v16 = vshll.u32 %v2268_v48, %v1339_v10  ;;  %v1348_v19 = vshll.u32 %v2269_v51, %v1339_v10 }
 0x441   : > { %v1351_v23 = vshll.u32 %v2270_v54, %v1339_v10  ;;  %v1354_v25 = vshll.u32 %v2271_v57, %v1339_v10  ;;  %vm1357_vm1 = vcmp.lt.s32.totalorder %v1338_v14, 1  ;;  %vm1360_vm2 = vcmp.lt.s32.totalorder %v1338_v14, 4 }
 0x442   : > { %v1343_v17 = vshrl.u32 %v2268_v48, %v1340_v12  ;;  %v1346_v18 = vshrl.u32 %v2269_v51, %v1340_v12  ;;  %v1349_v20 = vshrl.u32 %v2270_v54, %v1340_v12  ;;  %v1352_v24 = vshrl.u32 %v2271_v57, %v1340_v12 }
 0x443   : > { %v1355_v26 = vshrl.u32 %v2272_v60, %v1340_v12  ;;  %v1341_v36 = vshrl.u32 %v2267_v46, %v1340_v12  ;;  %vm1359_vm3 = vcmp.lt.s32.totalorder %v1338_v14, 3  ;;  %vm1358_vm4 = vcmp.lt.s32.totalorder %v1338_v14, 2 }
 0x444   : > { %v1344_v28 = vor.u32 %v1343_v17, %v1342_v15  ;;  %v1347_v3 = vor.u32 %v1346_v18, %v1345_v16  ;;  %v1350_v29 = vor.u32 %v1349_v20, %v1348_v19  ;;  %v1353_v30 = vor.u32 %v1352_v24, %v1351_v23 }
 0x445   : > { %v1356_v31 = vor.u32 %v1355_v26, %v1354_v25 }
 0x446   : > { %v1362_v32 = vsel %vm1360_vm2, %v1350_v29, 2102212464  ;;  %v1365_v33 = vsel %vm1357_vm1, %v1344_v28, %v1347_v3  ;;  %v1369_v34 = vsel %vm1357_vm1, %v1347_v3, %v1350_v29  ;;  %v1366_v58 = vsel %vm1360_vm2, %v1353_v30, 920167782 }
 0x447   : > { %v1370_v37 = vsel %vm1360_vm2, %v1356_v31, 1326507024  ;;  %v1367_v53 = vsel %vm1359_vm3, %v1350_v29, %v1366_v58  ;;  %v1361_v43 = vsel %vm1357_vm1, %v1341_v36, %v1344_v28  ;;  %v1363_v44 = vsel %vm1359_vm3, %v1347_v3, %v1362_v32 }
 0x448   : > { %v1371_v38 = vsel %vm1359_vm3, %v1353_v30, %v1370_v37  ;;  %v1368_v47 = vsel %vm1358_vm4, %v1365_v33, %v1367_v53  ;;  %v1364_v55 = vsel %vm1358_vm4, %v1361_v43, %v1363_v44  ;;  %v2159_v53 = vld [vmem:[%s2840_s11 + $0x4] ss:$8 sps:$4 sm:$0xff]   ;;  %v2163_v44 = vld [vmem:[%s2840_s11 + $0x20] ss:$8 sps:$4 sm:$0xff]  }
 0x449   : > { %v1372_v49 = vsel %vm1358_vm4, %v1369_v34, %v1371_v38  ;;  %v2679_v50 = vmul.u32.u64.low %v1373_v42, %v1368_v47  ;;  %v2680_v52 = vmul.u32.u64.high %v1373_v42, %v1368_v47, %v2679_v50  ;;  %v1380_v13 = vmul.u32 %v1373_v42, %v1364_v55  ;;  %v2157_v38 = vld [vmem:[%s2840_s11] ss:$8 sps:$4 sm:$0xff]   ;;  %1725 = vmatprep.subr.bf16.mxu0 %v2159_v53  ;;  %v2165_v43 = vld [vmem:[%s2840_s11 + $0x24] ss:$8 sps:$4 sm:$0xff]   ;;  %v2168_v47 = vld [vmem:[%s2840_s11 + $0x34] ss:$8 sps:$4 sm:$0xff]  }
 0x44a   : > { %v2676_v21 = vmul.u32.u64.low %v1373_v42, %v1372_v49  ;;  %v2677_v22 = vmul.u32.u64.high %v1373_v42, %v1372_v49, %v2676_v21  ;;  %1726 = vmatpush1.bf16.msra.mxu0 %v2157_v38  ;;  %v2162_v42 = vld [vmem:[%s2840_s11 + $0x14] ss:$8 sps:$4 sm:$0xff]   ;;  %v2166_v49 = vld [vmem:[%s2840_s11 + $0x30] ss:$8 sps:$4 sm:$0xff]   ;;  %v2177_v55 = vld [vmem:[%s2840_s11 + $0x64] ss:$8 sps:$4 sm:$0xff]  }
 0x44b   : > { %v1383_v56 = vadd.s32 1, %v2680_v52  ;;  %1727 = vmatprep.subr.bf16.mxu0 %v2162_v42  ;;  %v2169_v21 = vld [vmem:[%s2840_s11 + $0x40] ss:$8 sps:$4 sm:$0xff]  }
 0x44c   : > { %vm1382_vm5 = vc.u32 %v2677_v22, %v2679_v50  ;;  %v1381_v8 = vadd.s32 %v2679_v50, %v2677_v22  ;;  %v2171_v22 = vld [vmem:[%s2840_s11 + $0x44] ss:$8 sps:$4 sm:$0xff]   ;;  %v2174_v50 = vld [vmem:[%s2840_s11 + $0x54] ss:$8 sps:$4 sm:$0xff]  }
 0x44d   : > { %v1384_v59 = vsel %vm1382_vm5, %v1383_v56, %v2680_v52  ;;  %v2172_v52 = vld [vmem:[%s2840_s11 + $0x50] ss:$8 sps:$4 sm:$0xff]   ;;  %v2175_v56 = vld [vmem:[%s2840_s11 + $0x60] ss:$8 sps:$4 sm:$0xff]  }
 0x44e   : > { %v1385_v61 = vadd.s32 %v1384_v59, %v1380_v13  ;;  %v2180_v13 = vld [vmem:[%s2840_s11 + $0x74] ss:$8 sps:$4 sm:$0xff]   ;;  %v2178_v59 = vld [vmem:[%s2840_s11 + $0x70] ss:$8 sps:$4 sm:$0xff]  }
 0x450   : > { %v1386_v62 = vadd.s32 536870912, %v1385_v61 }
 0x452   : > { %v1387_v63 = vshrl.u32 %v1386_v62, 30 }
 0x454   : > { %v1388_v0 = vshll.u32 %v1387_v63, 30  ;;  %v1411_v23 = vsub.s32 4, %v1387_v63 }
 0x456   : > { %v1389_v1 = vsub.s32 %v1385_v61, %v1388_v0  ;;  %v1412_v26 = vsel %vm1327_vm7, %v1411_v23, %v1387_v63  ;;  %v1934_v61 = vld [vmem:[%s2839_s10] ss:$0 sm:$0xff] }
 0x457   : > { %v1414_v28 = vsel %vm1326_vm8, 0, %v1412_v26 }
 0x458   : > { %v1391_v2 = vsub.s32 0, %v1389_v1  ;;  %v1418_v3 = vadd.s32 3, %v1414_v28 }
 0x45a   : > { %v1931_v4 = vmin.u32 %v1391_v2, %v1389_v1  ;;  %v1419_v29 = vand.u32 3, %v1418_v3 }
 0x45c   : > { %v1393_v40 = vclz %v1931_v4  ;;  %vm1424_vm9 = vcmp.eq.s32.totalorder %v1419_v29, 2  ;;  %vm1421_vm10 = vcmp.eq.s32.totalorder %v1419_v29, 0  ;;  %vm1420_vm11 = vcmp.lt.s32.totalorder %v1419_v29, 2 }
 0x45e   : > { %v1932_v6 = vadd.s32 4294967294, %v1393_v40 }
 0x460   : > { %vm1933_vm6 = vcmp.lt.s32.totalorder %v1932_v6, 0 }
 0x461   : > { %v1396_v7 = vsel %vm1933_vm6, 0, %v1932_v6 }
 0x462   : > { %v1397_v35 = vsub.s32 32, %v1396_v7  ;;  %v1401_v10 = vsub.s32 4294967266, %v1396_v7  ;;  %v1398_v11 = vshll.u32 %v1389_v1, %v1396_v7 }
 0x464   : > { %v1399_v12 = vshrl.u32 %v1381_v8, %v1397_v35  ;;  %v1402_v14 = vadd.s32 127, %v1401_v10 }
 0x466   : > { %v1400_v15 = vor.u32 %v1399_v12, %v1398_v11  ;;  %v1403_v16 = vshll.u32 %v1402_v14, 23 }
 0x468   : > { %v1404_v17 = vor.u32 4788187, %v1403_v16  ;;  %v1407_v19 = vcvt.s32.f32 %v1400_v15 }
 0x46a   : > { %v1405_v18 = vand.u32 2147483647, %v1404_v17 }
 0x46c   : > { %v1408_v20 = vmul.f32 %v1407_v19, %v1405_v18 }
 0x46e   : > { %v1409_v24 = vxor.u32 2147483648, %v1408_v20 }
 0x470   : > { %v1410_v25 = vsel %vm1327_vm7, %v1409_v24, %v1408_v20 }
 0x471   : > { %v1413_v27 = vsel %vm1326_vm8, %v2659_v5, %v1410_v25  ;;  %v2160_v5 = vld [vmem:[%s2840_s11 + $0x10] ss:$8 sps:$4 sm:$0xff]  }
 0x472   : > { %2193 = vcosq.f32 %v1413_v27  ;;  %1728 = vmatpush1.bf16.msra.mxu0 %v2160_v5 }
 0x473   : > { %2195 = vsinq.f32 %v1413_v27  ;;  %1729 = vmatprep.subr.bf16.mxu0 %v2165_v43 }
 0x476   : > { %1730 = vmatpush1.bf16.msra.mxu0 %v2163_v44 }
 0x477   : > { %1731 = vmatprep.subr.bf16.mxu0 %v2168_v47 }
 0x47a   : > { %1732 = vmatpush1.bf16.msra.mxu0 %v2166_v49 }
 0x47b   : > { %1733 = vmatprep.subr.bf16.mxu0 %v2171_v22 }
 0x47c   : > { %v2194_v30 = vpop.eup %2193 }
 0x47d   : > { %v2196_v31 = vpop.eup %2195  ;;  %v1425_v32 = vxor.u32 2147483648, %v2194_v30 }
 0x47e   : > { %v1422_v33 = vxor.u32 2147483648, %v2196_v31  ;;  %1734 = vmatpush1.bf16.msra.mxu0 %v2169_v21 }
 0x47f   : > { %v1426_v34 = vsel %vm1424_vm9, %v1425_v32, %v2196_v31  ;;  %1735 = vmatprep.subr.bf16.mxu0 %v2174_v50 }
 0x480   : > { %v1423_v36 = vsel %vm1421_vm10, %v2194_v30, %v1422_v33 }
 0x481   : > { %v1427_v9 = vsel %vm1420_vm11, %v1423_v36, %v1426_v34 }
 0x482   : > { %v1428_v58 = vsel %vm1417_vm0, nan, %v1427_v9  ;;  %1736 = vmatpush1.bf16.msra.mxu0 %v2172_v52 }
 0x483   : > { %v1429_v37 = vpack.c.bf16 %v1428_v58, %v1428_v58  ;;  %1737 = vmatprep.subr.bf16.mxu0 %v2177_v55 }
 0x485   : > { %2049 = vmatmul.mubr.msk.bf16.vlgmr.msra.gmra.mrb[8].mxu1 %vm1017_vm12, %v1429_v37 }
 0x486   : > { %1738 = vmatpush1.bf16.msra.mxu0 %v2175_v56 }
 0x487   : > { %1739 = vmatprep.subr.bf16.mxu0 %v2180_v13 }
 0x48a   : > { %1740 = vmatpush1.bf16.msra.mxu0 %v2178_v59 }
 0x558   : > { %v1506_v62 = vpop.f32.mrb[8].mxu1 }
 0x559   : > { %v2743_v63 = vadd.f32 %v1934_v61, %v1506_v62  ;;  %v2050_v0 = vpop.f32.mrb[9].mxu1 }
 0x55a   : > { %v1509_v1 = vpop.f32.mrb[10].mxu1 }
 0x55b   : > { %v1515_v2 = vand.u32 2139095040, %v2743_v63  ;;  %v2051_v4 = vpop.f32.mrb[11].mxu1  ;;  %v1512_v8 = vand.u32 2147483647, %v2743_v63  ;;  %vm1514_vm4 = vcmp.lt.s32.totalorder %v2743_v63, 0  ;;  %vm1604_vm9 = vweird.f32 %v2743_v63 }
 0x55d   : > { %v1516_v40 = vshrl.u32 %v1515_v2, 23  ;;  %v1519_v11 = vand.u32 8388607, %v1512_v8  ;;  %vm1513_vm5 = vcmp.le.f32.partialorder %v1512_v8, 0.7853982 }
 0x55f   : > { %v1940_v6 = vadd.s32 4294967169, %v1516_v40  ;;  %v1520_v27 = vor.u32 8388608, %v1519_v11 }
 0x561   : > { %v1522_v7 = vadd.s32 1, %v1940_v6 }
 0x563   : > { %vm1523_vm12 = vcmp.gt.s32.totalorder %v1522_v7, 0 }
 0x564   : > { %v1524_v35 = vsel %vm1523_vm12, %v1522_v7, 0 }
 0x565   : > { %v1526_v10 = vand.u32 31, %v1524_v35  ;;  %v1525_v14 = vshrl.u32 %v1524_v35, 5 }
 0x567   : > { %v1527_v12 = vsub.s32 32, %v1526_v10  ;;  %v1529_v15 = vshll.u32 %v2267_v46, %v1526_v10  ;;  %v1532_v16 = vshll.u32 %v2268_v48, %v1526_v10  ;;  %v1535_v19 = vshll.u32 %v2269_v51, %v1526_v10 }
 0x568   : > { %v1538_v23 = vshll.u32 %v2270_v54, %v1526_v10  ;;  %v1541_v25 = vshll.u32 %v2271_v57, %v1526_v10  ;;  %vm1544_vm13 = vcmp.lt.s32.totalorder %v1525_v14, 1  ;;  %vm1547_vm14 = vcmp.lt.s32.totalorder %v1525_v14, 4 }
 0x569   : > { %v1530_v17 = vshrl.u32 %v2268_v48, %v1527_v12  ;;  %v1533_v18 = vshrl.u32 %v2269_v51, %v1527_v12  ;;  %v1536_v20 = vshrl.u32 %v2270_v54, %v1527_v12  ;;  %v1539_v24 = vshrl.u32 %v2271_v57, %v1527_v12 }
 0x56a   : > { %v1542_v26 = vshrl.u32 %v2272_v60, %v1527_v12  ;;  %v1528_v33 = vshrl.u32 %v2267_v46, %v1527_v12  ;;  %vm1546_vm15 = vcmp.lt.s32.totalorder %v1525_v14, 3  ;;  %vm1545_vm1 = vcmp.lt.s32.totalorder %v1525_v14, 2 }
 0x56b   : > { %v1531_v28 = vor.u32 %v1530_v17, %v1529_v15  ;;  %v1534_v3 = vor.u32 %v1533_v18, %v1532_v16  ;;  %v1537_v29 = vor.u32 %v1536_v20, %v1535_v19  ;;  %v1540_v30 = vor.u32 %v1539_v24, %v1538_v23 }
 0x56c   : > { %v1543_v48 = vor.u32 %v1542_v26, %v1541_v25  ;;  %v1560_v60 = vshll.u32 %v1520_v27, 8 }
 0x56d   : > { %v1549_v31 = vsel %vm1547_vm14, %v1537_v29, 2102212464  ;;  %v1552_v51 = vsel %vm1544_vm13, %v1531_v28, %v1534_v3  ;;  %v1556_v32 = vsel %vm1544_vm13, %v1534_v3, %v1537_v29  ;;  %v1553_v54 = vsel %vm1547_vm14, %v1540_v30, 920167782 }
 0x56e   : > { %v1557_v34 = vsel %vm1547_vm14, %v1543_v48, 1326507024  ;;  %v1554_v57 = vsel %vm1546_vm15, %v1537_v29, %v1553_v54  ;;  %v1548_v9 = vsel %vm1544_vm13, %v1528_v33, %v1531_v28  ;;  %v1550_v58 = vsel %vm1546_vm15, %v1534_v3, %v1549_v31  ;;  %v1633_v31 = vld [vmem:[%s2841_s12] sm:$0x3] }
 0x56f   : > { %v1558_v36 = vsel %vm1546_vm15, %v1540_v30, %v1557_v34  ;;  %v1555_v37 = vsel %vm1545_vm1, %v1552_v51, %v1554_v57  ;;  %v1551_v44 = vsel %vm1545_vm1, %v1548_v9, %v1550_v58  ;;  %v1638_v51 = vrot.slane %v1633_v31, %v1285_v41 }
 0x570   : > { %v1559_v53 = vsel %vm1545_vm1, %v1556_v32, %v1558_v36  ;;  %v2763_v5 = vmul.u32.u64.low %v1560_v60, %v1555_v37  ;;  %v2764_v43 = vmul.u32.u64.high %v1560_v60, %v1555_v37, %v2763_v5  ;;  %v1567_v47 = vmul.u32 %v1560_v60, %v1551_v44 }
 0x571   : > { %v2760_v38 = vmul.u32.u64.low %v1560_v60, %v1559_v53  ;;  %v2761_v42 = vmul.u32.u64.high %v1560_v60, %v1559_v53, %v2760_v38  ;;  %v1642_v32 = vrot.slane %v1633_v31, %v1311_v45 }
 0x572   : > { %v1570_v46 = vadd.s32 1, %v2764_v43 }
 0x573   : > { %vm1569_vm2 = vc.u32 %v2761_v42, %v2763_v5  ;;  %v1568_v0 = vadd.s32 %v2763_v5, %v2761_v42 }
 0x574   : > { %v1571_v49 = vsel %vm1569_vm2, %v1570_v46, %v2764_v43 }
 0x575   : > { %v1572_v21 = vadd.s32 %v1571_v49, %v1567_v47 }
 0x577   : > { %v1573_v22 = vadd.s32 536870912, %v1572_v21 }
 0x579   : > { %v1574_v50 = vshrl.u32 %v1573_v22, 30 }
 0x57b   : > { %v1575_v52 = vshll.u32 %v1574_v50, 30  ;;  %v1598_v15 = vsub.s32 4, %v1574_v50 }
 0x57d   : > { %v1576_v55 = vsub.s32 %v1572_v21, %v1575_v52  ;;  %v1599_v18 = vsel %vm1514_vm4, %v1598_v15, %v1574_v50 }
 0x57e   : > { %v1601_v20 = vsel %vm1513_vm5, 0, %v1599_v18 }
 0x57f   : > { %v1578_v56 = vsub.s32 0, %v1576_v55  ;;  %v1605_v23 = vadd.s32 3, %v1601_v20 }
 0x581   : > { %v1941_v13 = vmin.u32 %v1578_v56, %v1576_v55  ;;  %v1606_v24 = vand.u32 3, %v1605_v23 }
 0x583   : > { %v1580_v59 = vclz %v1941_v13  ;;  %vm1611_vm6 = vcmp.eq.s32.totalorder %v1606_v24, 2  ;;  %vm1608_vm7 = vcmp.eq.s32.totalorder %v1606_v24, 0  ;;  %vm1607_vm8 = vcmp.lt.s32.totalorder %v1606_v24, 2 }
 0x585   : > { %v1942_v61 = vadd.s32 4294967294, %v1580_v59 }
 0x587   : > { %vm1943_vm3 = vcmp.lt.s32.totalorder %v1942_v61, 0 }
 0x588   : > { %v1583_v62 = vsel %vm1943_vm3, 0, %v1942_v61 }
 0x589   : > { %v1584_v1 = vsub.s32 32, %v1583_v62  ;;  %v1588_v2 = vsub.s32 4294967266, %v1583_v62  ;;  %v1585_v4 = vshll.u32 %v1576_v55, %v1583_v62 }
 0x58b   : > { %v1586_v40 = vshrl.u32 %v1568_v0, %v1584_v1  ;;  %v1589_v6 = vadd.s32 127, %v1588_v2 }
 0x58d   : > { %v1587_v7 = vor.u32 %v1586_v40, %v1585_v4  ;;  %v1590_v35 = vshll.u32 %v1589_v6, 23 }
 0x58f   : > { %v1591_v10 = vor.u32 4788187, %v1590_v35  ;;  %v1594_v12 = vcvt.s32.f32 %v1587_v7 }
 0x591   : > { %v1592_v11 = vand.u32 2147483647, %v1591_v10 }
 0x593   : > { %v1595_v14 = vmul.f32 %v1594_v12, %v1592_v11 }
 0x595   : > { %v1596_v16 = vxor.u32 2147483648, %v1595_v14 }
 0x597   : > { %v1597_v17 = vsel %vm1514_vm4, %v1596_v16, %v1595_v14 }
 0x598   : > { %v1600_v19 = vsel %vm1513_vm5, %v2743_v63, %v1597_v17 }
 0x599   : > { %2197 = vcosq.f32 %v1600_v19 }
 0x59a   : > { %2199 = vsinq.f32 %v1600_v19 }
 0x5a3   : > { %v2198_v25 = vpop.eup %2197 }
 0x5a4   : > { %v2200_v26 = vpop.eup %2199  ;;  %v1612_v27 = vxor.u32 2147483648, %v2198_v25 }
 0x5a5   : > { %v1609_v28 = vxor.u32 2147483648, %v2200_v26 }
 0x5a6   : > { %v1613_v3 = vsel %vm1611_vm6, %v1612_v27, %v2200_v26 }
 0x5a7   : > { %v1610_v8 = vsel %vm1608_vm7, %v2198_v25, %v1609_v28 }
 0x5a8   : > { %v1614_v29 = vsel %vm1607_vm8, %v1610_v8, %v1613_v3 }
 0x5a9   : > { %v1615_v30 = vsel %vm1604_vm9, nan, %v1614_v29 }
 0x5aa   : > { %v1616_v48 = vpack.c.bf16 %v1615_v30, %v1615_v30 }
 0x5ac   : > { %1758 = vmatmul.mubr.bf16.vlgmr.msra.gmra.mrb[4].mxu0 %v1616_v48 }
 0x67f   : > { %v1759_v63 = vpop.f32.mrb[4].mxu0 }
 0x680   : > { %v1760_v33 = vadd.f32 %v1759_v63, %v1638_v51  ;;  %v1761_v54 = vpop.f32.mrb[5].mxu0 }
 0x681   : > { %v1762_v34 = vadd.f32 %v1761_v54, %v1642_v32  ;;  %v1763_v57 = vpop.f32.mrb[6].mxu0 }
 0x682   : > { %1766 = vst [vmem:[%s461_s22] sm:$0xff] %v1760_v33  ;;  %v1764_v39 = vpop.f32.mrb[7].mxu0 }
 0x683   : > { %1767 = vst [vmem:[%s461_s22 + $0x8] sm:$0xff] %v1762_v34 }
 0x684   : > { %2214 = shalt.err (!%p2211_p3)
}
 0x685   : > { %s2215_s26 = scalar_lea.hbm %s2787_s19, 256  ;;  %s2219_s15 = scalar_lea.hbm %s2842_s13, 512 }
 0x686   : > { %p2216_p4 = scmp.ne.s32.totalorder %s2787_s19, %s2215_s26  ;;  %p2220_p9 = scmp.lt.u32.totalorder %s2787_s19, %s2842_s13 }
 0x687   : > { %p2221_p10 = scmp.lt.u32.totalorder %s2219_s15, %s2215_s26  ;;  %p2223_p12 = scmp.lt.u32.totalorder %s2215_s26, %s2787_s19 }
 0x688   : > { %p2217_p7 = pnand %p2216_p4, %p2390_p5 }
 0x689   : > { %p2222_p11 = por %p2221_p10, %p2220_p9 }
 0x68a   : > { %p2218_p8 = pneg %p2217_p7 }
 0x68b   : > { %p2224_p13 = por %p2223_p12, %p2222_p11 }
 0x68d   : > { %p2225_p0 = pnand %p2224_p13, %p2218_p8 }
 0x68f   : > { %2228 = shalt.err (!%p2225_p0)
}
 0x690   : > { %2072 = dma.vmem_to_hbm [thread:$0]  (%p2390_p5), %s2789_s28, 256, %s2787_s19, %s1769_s17  }
 0x691 PF: > { %s2858_s20 = sld [smem:[#allocation7_spill]]  ;;  %s2859_s21 = sld [smem:[#allocation5_spill]] }
 0x697   : > { %p2078_p1 = scmp.ge.s32.totalorder %s2858_s20, 2  ;;  %s1802_s27 = sand.u32 1, %s2859_s21  }
 0x698   : > { %s1803_s29 = scalar_lea.sflag [#allocation3], %s1802_s27 }
 0x699   : > { %p2075_p2 = pnand %p2078_p1, %p2394_p6 }
 0x69b   : > { %2246 = dma.done.wait (!%p2075_p2), %s1803_s29, 256  }
 0x69c   : > { %2248 = vsyncadd (!%p2075_p2), %s1803_s29, 4294967040  ;;  %s2861_s16 = sld [smem:[#allocation8_spill]]  ;;  %s2862_s26 = sld [smem:[#allocation6_spill]] }
 0x69d   : > { %s2863_s15 = sld [smem:[#allocation9_spill]]  ;;  %s2864_s29 = smov %s2255_s30 }
 0x6a2   : > { %p25_p3 = scmp.ge.s32.totalorder %s2861_s16, 4   ;;  %s2865_s30 = smov %s2862_s26 }
 0x6a4   :  { %27 = sbr.rel (!%p25_p3) target bundleno = 3 (0x3), region = 119 }
 0x6ab   :  { %1815 = vsyncpa [#allocation3], 1 }
 0x6ac   :  { %1817 = vsyncpa [#allocation3 + $0x1], 1 }

</bundles_post_ra>
